<compile_context>
chip_gen: v7x
topology: tpu7x:2x2x1
jax: 0.10.0
libtpu: 0.0.40
codegen_flags: <defaults>
</compile_context>

<pallas_src>
import jax
import jax.numpy as jnp
from jax import lax
from jax.experimental import pallas as pl
from jax.experimental.pallas import tpu as pltpu


# ---------------------------------------------------------------------------
# Fused decoder kernel: 2-layer LSTM over all timesteps + output Linear
# ---------------------------------------------------------------------------
def _make_decoder_kernel(T, B, H, V):
    TB = T * B

    def kernel(x_ref, wih0_ref, whh0_ref, b0_ref,
               wih1_ref, whh1_ref, b1_ref,
               linw_ref, linb_ref,
               out_ref,
               xproj_ref, hall_ref):
        # Hoisted weight loads and bias broadcasts (once per invocation; JAX
        # does not CSE broadcast_in_dim inside the loop body).
        whh0 = whh0_ref[...]                                  # (H,  4H)
        wih1 = wih1_ref[...]                                  # (H,  4H)
        whh1 = whh1_ref[...]                                  # (H,  4H)
        b0 = jnp.broadcast_to(b0_ref[...], (B, 4 * H))
        b1 = jnp.broadcast_to(b1_ref[...], (B, 4 * H))

        # (1) layer-0 input projection for ALL timesteps, off the serial chain:
        #     one (T*B, Ein) @ (Ein, 4H) MXU op staged in VMEM scratch.
        xproj_ref[...] = jnp.dot(x_ref[...], wih0_ref[...],
                                 preferred_element_type=jnp.float32)

        def lstm_gates(gates, c):
            # Gate columns were reordered in the wrapper to (i, f, o | g):
            # one sigmoid over (B, 3H) + one tanh over (B, H).
            ifo = jax.nn.sigmoid(gates[:, :3 * H])
            g = jnp.tanh(gates[:, 3 * H:])
            i_g = ifo[:, :H]
            f_g = ifo[:, H:2 * H]
            o_g = ifo[:, 2 * H:]
            c_new = f_g * c + i_g * g
            h_new = o_g * jnp.tanh(c_new)
            return h_new, c_new

        def body(t, carry):
            h0, c0, h1, c1 = carry
            row = pl.multiple_of(t * B, 8)                    # sublane-aligned

            # layer 0: only the h-recurrence matmul on the serial chain
            gates0 = (xproj_ref[pl.ds(row, B), :]
                      + jnp.dot(h0, whh0, preferred_element_type=jnp.float32)
                      + b0)
            h0, c0 = lstm_gates(gates0, c0)

            # layer 1: two small matmuls, no lane concat
            gates1 = (jnp.dot(h0, wih1, preferred_element_type=jnp.float32)
                      + jnp.dot(h1, whh1, preferred_element_type=jnp.float32)
                      + b1)
            h1, c1 = lstm_gates(gates1, c1)

            # stage hidden; output Linear is applied once after the loop
            hall_ref[pl.ds(row, B), :] = h1
            return h0, c0, h1, c1

        z = jnp.zeros((B, H), jnp.float32)
        lax.fori_loop(0, T, body, (z, z, z, z),
                      unroll=True if T <= 16 else 4)

        # (3) output Linear hoisted after the recurrence: one (T*B, H) @ (H, V)
        #     MXU op and a single unmasked lane-dense slab store.
        out_ref[...] = (jnp.dot(hall_ref[...], linw_ref[...],
                                preferred_element_type=jnp.float32)
                        + jnp.broadcast_to(linb_ref[...], (TB, V)))

    return kernel


def decoder_lstm_linear(x_flat, wih0, whh0, b0, wih1, whh1, b1, linw, linb,
                        T, B_pad):
    """x_flat: (T*B_pad, Ein) time-major, batch-padded input.
    Returns flat per-(t, b) logits (T*B_pad, V)."""
    TB, Ein = x_flat.shape
    H4 = wih0.shape[1]
    H = H4 // 4
    V = linw.shape[1]

    kernel = _make_decoder_kernel(T, B_pad, H, V)
    return pl.pallas_call(
        kernel,
        out_shape=jax.ShapeDtypeStruct((TB, V), jnp.float32),
        grid_spec=pltpu.PrefetchScalarGridSpec(
            num_scalar_prefetch=0,
            grid=(1,),                     # single invocation; time loop inside
            in_specs=[
                pl.BlockSpec((TB, Ein), lambda i: (0, 0)),    # x
                pl.BlockSpec((Ein, H4), lambda i: (0, 0)),    # W_ih0^T (i,f,o,g)
                pl.BlockSpec((H, H4), lambda i: (0, 0)),      # W_hh0^T
                pl.BlockSpec((1, H4), lambda i: (0, 0)),      # b0
                pl.BlockSpec((H, H4), lambda i: (0, 0)),      # W_ih1^T
                pl.BlockSpec((H, H4), lambda i: (0, 0)),      # W_hh1^T
                pl.BlockSpec((1, H4), lambda i: (0, 0)),      # b1
                pl.BlockSpec((H, V), lambda i: (0, 0)),       # linear W^T
                pl.BlockSpec((1, V), lambda i: (0, 0)),       # linear b
            ],
            out_specs=pl.BlockSpec((TB, V), lambda i: (0, 0)),
            scratch_shapes=[
                pltpu.VMEM((TB, H4), jnp.float32),   # precomputed x projection
                pltpu.VMEM((TB, H), jnp.float32),    # per-step h1 staging
            ]),
        compiler_params=pltpu.CompilerParams(
            dimension_semantics=("arbitrary",)),
    )(x_flat, wih0, whh0, b0, wih1, whh1, b1, linw, linb)


# ---------------------------------------------------------------------------
# DecoderRNN forward (glue + fused kernel)
# ---------------------------------------------------------------------------
def _gate_cols(w):
    """PyTorch (4H, in) stacked [i; f; g; o] -> (in, 4H) columns [i|f|o|g]."""
    i, f, g, o = jnp.split(w, 4, axis=0)
    return jnp.concatenate([i, f, o, g], axis=0).T


def _gate_bias(b_ih, b_hh):
    b = b_ih + b_hh
    i, f, g, o = jnp.split(b, 4)
    return jnp.concatenate([i, f, o, g]).reshape(1, -1)


def decoder_forward(params, features, tags, captions, lengths, hidden_size):
    (embed_w, w_ih0, w_hh0, b_ih0, b_hh0,
     w_ih1, w_hh1, b_ih1, b_hh1, lin_w, lin_b) = params

    B, T_cap = captions.shape
    T = T_cap + 1
    tag_size = tags.shape[1]
    B_pad = max(8, ((B + 7) // 8) * 8)     # full f32 sublane occupancy

    # embedding lookup + concatenations (XLA glue)
    emb = embed_w[captions]                                          # (B, Tc, E)
    emb = jnp.concatenate([features[:, None, :], emb], axis=1)       # (B, T, E)
    tags_b = jnp.broadcast_to(tags[:, None, :], (B, T, tag_size))
    x = jnp.concatenate([emb, tags_b], axis=-1)                      # (B, T, Ein)
    x = jnp.transpose(x, (1, 0, 2))                                  # (T, B, Ein)
    x = jnp.pad(x, ((0, 0), (0, B_pad - B), (0, 0)))                 # pad batch
    x_flat = x.reshape(T * B_pad, -1)                                # (T*Bp, Ein)

    # gate-reordered (i, f, o, g), transposed weights; fused b_ih + b_hh
    wih0 = _gate_cols(w_ih0)
    whh0 = _gate_cols(w_hh0)
    wih1 = _gate_cols(w_ih1)
    whh1 = _gate_cols(w_hh1)
    b0 = _gate_bias(b_ih0, b_hh0)
    b1 = _gate_bias(b_ih1, b_hh1)

    logits_flat = decoder_lstm_linear(
        x_flat, wih0, whh0, b0, wih1, whh1, b1,
        lin_w.T, lin_b.reshape(1, -1), T, B_pad)                     # (T*Bp, V)

    # pack_padded_sequence(batch_first=True).data ordering: timestep-major,
    # within a timestep only batches with lengths[b] > t, in batch order
    # (lengths sorted descending). Linear is row-wise, so gathering logits ==
    # linear(gathered hiddens).
    idx_t, idx_b = [], []
    for t in range(T):
        for b in range(B):
            if lengths[b] > t:
                idx_t.append(t)
                idx_b.append(b)
    flat_idx = jnp.array([t * B_pad + b for t, b in zip(idx_t, idx_b)])
    outputs = logits_flat[flat_idx]                                  # (sum, V)
    return outputs, (idx_t, idx_b)


# ---------------------------------------------------------------------------
if __name__ == "__main__":
    B = 2
    embed_size = 16
    hidden_size = 32
    vocab_size = 128          # lane-dense logits (multiple of 128)
    tag_size = 8
    T_cap = 8
    lengths = [9, 7]          # sorted descending; max == T_cap + 1; sum == 16
    Ein = embed_size + tag_size

    key = jax.random.PRNGKey(0)
    ks = jax.random.split(key, 16)
    k = 1.0 / jnp.sqrt(hidden_size)

    def uni(kk, shape):
        return jax.random.uniform(kk, shape, jnp.float32, -k, k)

    embed_w = jax.random.normal(ks[0], (vocab_size, embed_size), jnp.float32)
    w_ih0 = uni(ks[1], (4 * hidden_size, Ein))
    w_hh0 = uni(ks[2], (4 * hidden_size, hidden_size))
    b_ih0 = uni(ks[3], (4 * hidden_size,))
    b_hh0 = uni(ks[4], (4 * hidden_size,))
    w_ih1 = uni(ks[5], (4 * hidden_size, hidden_size))
    w_hh1 = uni(ks[6], (4 * hidden_size, hidden_size))
    b_ih1 = uni(ks[7], (4 * hidden_size,))
    b_hh1 = uni(ks[8], (4 * hidden_size,))
    lin_w = uni(ks[9], (vocab_size, hidden_size))
    lin_b = uni(ks[10], (vocab_size,))

    params = (embed_w, w_ih0, w_hh0, b_ih0, b_hh0,
              w_ih1, w_hh1, b_ih1, b_hh1, lin_w, lin_b)

    features = jax.random.normal(ks[11], (B, embed_size), jnp.float32)
    tags = jax.random.normal(ks[12], (B, tag_size), jnp.float32)
    captions = jax.random.randint(ks[13], (B, T_cap), 0, vocab_size)

    outputs, (idx_t, idx_b) = decoder_forward(
        params, features, tags, captions, lengths, hidden_size)
    outputs = jax.block_until_ready(outputs)

    # ----- pure-JAX reference check (matches the PyTorch module) -----
    def ref_forward():
        Tsteps = T_cap + 1
        emb = embed_w[captions]
        emb = jnp.concatenate([features[:, None, :], emb], axis=1)
        tags_b = jnp.broadcast_to(tags[:, None, :], (B, Tsteps, tag_size))
        x_tag = jnp.concatenate([emb, tags_b], axis=-1)

        def cell(xin, h, c, wih, whh, bih, bhh):
            g = xin @ wih.T + bih + h @ whh.T + bhh
            i, f, gg, o = jnp.split(g, 4, axis=-1)
            c = jax.nn.sigmoid(f) * c + jax.nn.sigmoid(i) * jnp.tanh(gg)
            h = jax.nn.sigmoid(o) * jnp.tanh(c)
            return h, c

        h0 = jnp.zeros((B, hidden_size)); c0 = jnp.zeros_like(h0)
        h1 = jnp.zeros_like(h0); c1 = jnp.zeros_like(h0)
        outs = []
        for t in range(Tsteps):
            x = x_tag[:, t, :]
            h0, c0 = cell(x, h0, c0, w_ih0, w_hh0, b_ih0, b_hh0)
            h1, c1 = cell(h0, h1, c1, w_ih1, w_hh1, b_ih1, b_hh1)
            outs.append(h1)
        hid = jnp.stack(outs, axis=1)                       # (B, Ts, H)
        pk = hid[jnp.array(idx_b), jnp.array(idx_t)]
        return pk @ lin_w.T + lin_b

    ref = ref_forward()
    assert outputs.shape == (sum(lengths), vocab_size)
    assert jnp.allclose(outputs, ref, atol=1e-4, rtol=1e-4)

    print("KERNEL_OK")
</pallas_src>

<mosaic_0001>
module attributes {stable_mosaic.version = 11 : i64} {
  func.func @kernel(%arg0: i32, %arg1: memref<72x24xf32, #tpu.memory_space<vmem>>, %arg2: memref<24x128xf32, #tpu.memory_space<vmem>>, %arg3: memref<32x128xf32, #tpu.memory_space<vmem>>, %arg4: memref<1x128xf32, #tpu.memory_space<vmem>>, %arg5: memref<32x128xf32, #tpu.memory_space<vmem>>, %arg6: memref<32x128xf32, #tpu.memory_space<vmem>>, %arg7: memref<1x128xf32, #tpu.memory_space<vmem>>, %arg8: memref<32x128xf32, #tpu.memory_space<vmem>>, %arg9: memref<1x128xf32, #tpu.memory_space<vmem>>, %arg10: memref<72x128xf32, #tpu.memory_space<vmem>>, %arg11: memref<72x128xf32, #tpu.memory_space<vmem>>, %arg12: memref<72x32xf32, #tpu.memory_space<vmem>>) attributes {dimension_semantics = [#tpu.dimension_semantics<arbitrary>], iteration_bounds = array<i64: 1>, scalar_prefetch = 0 : i64, scratch_operands = 2 : i64, tpu.core_type = #tpu.core_type<tc>, window_params = [{pipeline_mode = #tpu.pipeline_mode<synchronous>, transform_indices = @transform_0, window_bounds = array<i64: 72, 24>}, {pipeline_mode = #tpu.pipeline_mode<synchronous>, transform_indices = @transform_1, window_bounds = array<i64: 24, 128>}, {pipeline_mode = #tpu.pipeline_mode<synchronous>, transform_indices = @transform_2, window_bounds = array<i64: 32, 128>}, {pipeline_mode = #tpu.pipeline_mode<synchronous>, transform_indices = @transform_3, window_bounds = array<i64: 1, 128>}, {pipeline_mode = #tpu.pipeline_mode<synchronous>, transform_indices = @transform_4, window_bounds = array<i64: 32, 128>}, {pipeline_mode = #tpu.pipeline_mode<synchronous>, transform_indices = @transform_5, window_bounds = array<i64: 32, 128>}, {pipeline_mode = #tpu.pipeline_mode<synchronous>, transform_indices = @transform_6, window_bounds = array<i64: 1, 128>}, {pipeline_mode = #tpu.pipeline_mode<synchronous>, transform_indices = @transform_7, window_bounds = array<i64: 32, 128>}, {pipeline_mode = #tpu.pipeline_mode<synchronous>, transform_indices = @transform_8, window_bounds = array<i64: 1, 128>}, {pipeline_mode = #tpu.pipeline_mode<synchronous>, transform_indices = @transform_9, window_bounds = array<i64: 72, 128>}]} {
    %c0 = arith.constant 0 : index
    %c0_0 = arith.constant 0 : index
    %0 = vector.load %arg3[%c0, %c0_0] : memref<32x128xf32, #tpu.memory_space<vmem>>, vector<32x128xf32>
    %c0_1 = arith.constant 0 : index
    %c0_2 = arith.constant 0 : index
    %1 = vector.load %arg5[%c0_1, %c0_2] : memref<32x128xf32, #tpu.memory_space<vmem>>, vector<32x128xf32>
    %c0_3 = arith.constant 0 : index
    %c0_4 = arith.constant 0 : index
    %2 = vector.load %arg6[%c0_3, %c0_4] : memref<32x128xf32, #tpu.memory_space<vmem>>, vector<32x128xf32>
    %c0_5 = arith.constant 0 : index
    %c0_6 = arith.constant 0 : index
    %3 = vector.load %arg4[%c0_5, %c0_6] : memref<1x128xf32, #tpu.memory_space<vmem>>, vector<1x128xf32>
    %4 = vector.shape_cast %3 : vector<1x128xf32> to vector<1x128xf32>
    %5 = vector.broadcast %4 : vector<1x128xf32> to vector<8x128xf32>
    %c0_7 = arith.constant 0 : index
    %c0_8 = arith.constant 0 : index
    %6 = vector.load %arg7[%c0_7, %c0_8] : memref<1x128xf32, #tpu.memory_space<vmem>>, vector<1x128xf32>
    %7 = vector.shape_cast %6 : vector<1x128xf32> to vector<1x128xf32>
    %8 = vector.broadcast %7 : vector<1x128xf32> to vector<8x128xf32>
    %c0_9 = arith.constant 0 : index
    %c0_10 = arith.constant 0 : index
    %9 = vector.load %arg1[%c0_9, %c0_10] : memref<72x24xf32, #tpu.memory_space<vmem>>, vector<72x24xf32>
    %c0_11 = arith.constant 0 : index
    %c0_12 = arith.constant 0 : index
    %10 = vector.load %arg2[%c0_11, %c0_12] : memref<24x128xf32, #tpu.memory_space<vmem>>, vector<24x128xf32>
    %cst = arith.constant dense<0.000000e+00> : vector<72x128xf32>
    %11 = tpu.matmul %9, %10, %cst {dimension_numbers = #tpu.dot_dimension_numbers<[1], [0], [0], [1], [0, 0, 1, 1], [], []>} : vector<72x24xf32>, vector<24x128xf32>, vector<72x128xf32> -> vector<72x128xf32>
    %c0_13 = arith.constant 0 : index
    %c0_14 = arith.constant 0 : index
    %12 = vector.load %arg11[%c0_13, %c0_14] : memref<72x128xf32, #tpu.memory_space<vmem>>, vector<72x128xf32>
    tpu.vector_store %arg11[%c0_13, %c0_14], %11 {strides = array<i32>} : memref<72x128xf32, #tpu.memory_space<vmem>>, vector<72x128xf32>,
    %cst_15 = arith.constant 0.000000e+00 : f32
    %13 = vector.broadcast %cst_15 : f32 to vector<8x32xf32>
    %c0_i32 = arith.constant 0 : i32
    %c8_i32 = arith.constant 8 : i32
    %14 = arith.muli %c0_i32, %c8_i32 : i32
    %15 = tpu.assume_multiple %14, 8 : i32
    %16 = arith.index_cast %15 : i32 to index
    %c0_16 = arith.constant 0 : index
    %17 = vector.load %arg11[%16, %c0_16] : memref<72x128xf32, #tpu.memory_space<vmem>>, vector<8x128xf32>
    %cst_17 = arith.constant dense<0.000000e+00> : vector<8x128xf32>
    %18 = tpu.matmul %13, %0, %cst_17 {dimension_numbers = #tpu.dot_dimension_numbers<[1], [0], [0], [1], [0, 0, 1, 1], [], []>} : vector<8x32xf32>, vector<32x128xf32>, vector<8x128xf32> -> vector<8x128xf32>
    %19 = arith.addf %17, %18 : vector<8x128xf32>
    %20 = arith.addf %19, %5 : vector<8x128xf32>
    %21 = vector.extract_strided_slice %20 {offsets = [0, 0], sizes = [8, 96], strides = [1, 1]} : vector<8x128xf32> to vector<8x96xf32>
    %22 = arith.negf %21 : vector<8x96xf32>
    %23 = math.exp %22 : vector<8x96xf32>
    %cst_18 = arith.constant 1.000000e+00 : f32
    %24 = vector.broadcast %cst_18 : f32 to vector<8x96xf32>
    %25 = arith.addf %24, %23 : vector<8x96xf32>
    %26 = arith.divf %24, %25 : vector<8x96xf32>
    %27 = vector.extract_strided_slice %20 {offsets = [0, 96], sizes = [8, 32], strides = [1, 1]} : vector<8x128xf32> to vector<8x32xf32>
    %28 = math.tanh %27 : vector<8x32xf32>
    %29 = vector.extract_strided_slice %26 {offsets = [0, 0], sizes = [8, 32], strides = [1, 1]} : vector<8x96xf32> to vector<8x32xf32>
    %30 = vector.extract_strided_slice %26 {offsets = [0, 32], sizes = [8, 32], strides = [1, 1]} : vector<8x96xf32> to vector<8x32xf32>
    %31 = vector.extract_strided_slice %26 {offsets = [0, 64], sizes = [8, 32], strides = [1, 1]} : vector<8x96xf32> to vector<8x32xf32>
    %32 = arith.mulf %30, %13 : vector<8x32xf32>
    %33 = arith.mulf %29, %28 : vector<8x32xf32>
    %34 = arith.addf %32, %33 : vector<8x32xf32>
    %35 = math.tanh %34 : vector<8x32xf32>
    %36 = arith.mulf %31, %35 : vector<8x32xf32>
    %cst_19 = arith.constant dense<0.000000e+00> : vector<8x128xf32>
    %37 = tpu.matmul %36, %1, %cst_19 {dimension_numbers = #tpu.dot_dimension_numbers<[1], [0], [0], [1], [0, 0, 1, 1], [], []>} : vector<8x32xf32>, vector<32x128xf32>, vector<8x128xf32> -> vector<8x128xf32>
    %cst_20 = arith.constant dense<0.000000e+00> : vector<8x128xf32>
    %38 = tpu.matmul %13, %2, %cst_20 {dimension_numbers = #tpu.dot_dimension_numbers<[1], [0], [0], [1], [0, 0, 1, 1], [], []>} : vector<8x32xf32>, vector<32x128xf32>, vector<8x128xf32> -> vector<8x128xf32>
    %39 = arith.addf %37, %38 : vector<8x128xf32>
    %40 = arith.addf %39, %8 : vector<8x128xf32>
    %41 = vector.extract_strided_slice %40 {offsets = [0, 0], sizes = [8, 96], strides = [1, 1]} : vector<8x128xf32> to vector<8x96xf32>
    %42 = arith.negf %41 : vector<8x96xf32>
    %43 = math.exp %42 : vector<8x96xf32>
    %cst_21 = arith.constant 1.000000e+00 : f32
    %44 = vector.broadcast %cst_21 : f32 to vector<8x96xf32>
    %45 = arith.addf %44, %43 : vector<8x96xf32>
    %46 = arith.divf %44, %45 : vector<8x96xf32>
    %47 = vector.extract_strided_slice %40 {offsets = [0, 96], sizes = [8, 32], strides = [1, 1]} : vector<8x128xf32> to vector<8x32xf32>
    %48 = math.tanh %47 : vector<8x32xf32>
    %49 = vector.extract_strided_slice %46 {offsets = [0, 0], sizes = [8, 32], strides = [1, 1]} : vector<8x96xf32> to vector<8x32xf32>
    %50 = vector.extract_strided_slice %46 {offsets = [0, 32], sizes = [8, 32], strides = [1, 1]} : vector<8x96xf32> to vector<8x32xf32>
    %51 = vector.extract_strided_slice %46 {offsets = [0, 64], sizes = [8, 32], strides = [1, 1]} : vector<8x96xf32> to vector<8x32xf32>
    %52 = arith.mulf %50, %13 : vector<8x32xf32>
    %53 = arith.mulf %49, %48 : vector<8x32xf32>
    %54 = arith.addf %52, %53 : vector<8x32xf32>
    %55 = math.tanh %54 : vector<8x32xf32>
    %56 = arith.mulf %51, %55 : vector<8x32xf32>
    %57 = arith.index_cast %15 : i32 to index
    %c0_22 = arith.constant 0 : index
    %58 = vector.load %arg12[%57, %c0_22] : memref<72x32xf32, #tpu.memory_space<vmem>>, vector<8x32xf32>
    tpu.vector_store %arg12[%57, %c0_22], %56 {strides = array<i32>} : memref<72x32xf32, #tpu.memory_space<vmem>>, vector<8x32xf32>,
    %c1_i32 = arith.constant 1 : i32
    %c8_i32_23 = arith.constant 8 : i32
    %59 = arith.muli %c1_i32, %c8_i32_23 : i32
    %60 = tpu.assume_multiple %59, 8 : i32
    %61 = arith.index_cast %60 : i32 to index
    %c0_24 = arith.constant 0 : index
    %62 = vector.load %arg11[%61, %c0_24] : memref<72x128xf32, #tpu.memory_space<vmem>>, vector<8x128xf32>
    %cst_25 = arith.constant dense<0.000000e+00> : vector<8x128xf32>
    %63 = tpu.matmul %36, %0, %cst_25 {dimension_numbers = #tpu.dot_dimension_numbers<[1], [0], [0], [1], [0, 0, 1, 1], [], []>} : vector<8x32xf32>, vector<32x128xf32>, vector<8x128xf32> -> vector<8x128xf32>
    %64 = arith.addf %62, %63 : vector<8x128xf32>
    %65 = arith.addf %64, %5 : vector<8x128xf32>
    %66 = vector.extract_strided_slice %65 {offsets = [0, 0], sizes = [8, 96], strides = [1, 1]} : vector<8x128xf32> to vector<8x96xf32>
    %67 = arith.negf %66 : vector<8x96xf32>
    %68 = math.exp %67 : vector<8x96xf32>
    %cst_26 = arith.constant 1.000000e+00 : f32
    %69 = vector.broadcast %cst_26 : f32 to vector<8x96xf32>
    %70 = arith.addf %69, %68 : vector<8x96xf32>
    %71 = arith.divf %69, %70 : vector<8x96xf32>
    %72 = vector.extract_strided_slice %65 {offsets = [0, 96], sizes = [8, 32], strides = [1, 1]} : vector<8x128xf32> to vector<8x32xf32>
    %73 = math.tanh %72 : vector<8x32xf32>
    %74 = vector.extract_strided_slice %71 {offsets = [0, 0], sizes = [8, 32], strides = [1, 1]} : vector<8x96xf32> to vector<8x32xf32>
    %75 = vector.extract_strided_slice %71 {offsets = [0, 32], sizes = [8, 32], strides = [1, 1]} : vector<8x96xf32> to vector<8x32xf32>
    %76 = vector.extract_strided_slice %71 {offsets = [0, 64], sizes = [8, 32], strides = [1, 1]} : vector<8x96xf32> to vector<8x32xf32>
    %77 = arith.mulf %75, %34 : vector<8x32xf32>
    %78 = arith.mulf %74, %73 : vector<8x32xf32>
    %79 = arith.addf %77, %78 : vector<8x32xf32>
    %80 = math.tanh %79 : vector<8x32xf32>
    %81 = arith.mulf %76, %80 : vector<8x32xf32>
    %cst_27 = arith.constant dense<0.000000e+00> : vector<8x128xf32>
    %82 = tpu.matmul %81, %1, %cst_27 {dimension_numbers = #tpu.dot_dimension_numbers<[1], [0], [0], [1], [0, 0, 1, 1], [], []>} : vector<8x32xf32>, vector<32x128xf32>, vector<8x128xf32> -> vector<8x128xf32>
    %cst_28 = arith.constant dense<0.000000e+00> : vector<8x128xf32>
    %83 = tpu.matmul %56, %2, %cst_28 {dimension_numbers = #tpu.dot_dimension_numbers<[1], [0], [0], [1], [0, 0, 1, 1], [], []>} : vector<8x32xf32>, vector<32x128xf32>, vector<8x128xf32> -> vector<8x128xf32>
    %84 = arith.addf %82, %83 : vector<8x128xf32>
    %85 = arith.addf %84, %8 : vector<8x128xf32>
    %86 = vector.extract_strided_slice %85 {offsets = [0, 0], sizes = [8, 96], strides = [1, 1]} : vector<8x128xf32> to vector<8x96xf32>
    %87 = arith.negf %86 : vector<8x96xf32>
    %88 = math.exp %87 : vector<8x96xf32>
    %cst_29 = arith.constant 1.000000e+00 : f32
    %89 = vector.broadcast %cst_29 : f32 to vector<8x96xf32>
    %90 = arith.addf %89, %88 : vector<8x96xf32>
    %91 = arith.divf %89, %90 : vector<8x96xf32>
    %92 = vector.extract_strided_slice %85 {offsets = [0, 96], sizes = [8, 32], strides = [1, 1]} : vector<8x128xf32> to vector<8x32xf32>
    %93 = math.tanh %92 : vector<8x32xf32>
    %94 = vector.extract_strided_slice %91 {offsets = [0, 0], sizes = [8, 32], strides = [1, 1]} : vector<8x96xf32> to vector<8x32xf32>
    %95 = vector.extract_strided_slice %91 {offsets = [0, 32], sizes = [8, 32], strides = [1, 1]} : vector<8x96xf32> to vector<8x32xf32>
    %96 = vector.extract_strided_slice %91 {offsets = [0, 64], sizes = [8, 32], strides = [1, 1]} : vector<8x96xf32> to vector<8x32xf32>
    %97 = arith.mulf %95, %54 : vector<8x32xf32>
    %98 = arith.mulf %94, %93 : vector<8x32xf32>
    %99 = arith.addf %97, %98 : vector<8x32xf32>
    %100 = math.tanh %99 : vector<8x32xf32>
    %101 = arith.mulf %96, %100 : vector<8x32xf32>
    %102 = arith.index_cast %60 : i32 to index
    %c0_30 = arith.constant 0 : index
    %103 = vector.load %arg12[%102, %c0_30] : memref<72x32xf32, #tpu.memory_space<vmem>>, vector<8x32xf32>
    tpu.vector_store %arg12[%102, %c0_30], %101 {strides = array<i32>} : memref<72x32xf32, #tpu.memory_space<vmem>>, vector<8x32xf32>,
    %c2_i32 = arith.constant 2 : i32
    %c8_i32_31 = arith.constant 8 : i32
    %104 = arith.muli %c2_i32, %c8_i32_31 : i32
    %105 = tpu.assume_multiple %104, 8 : i32
    %106 = arith.index_cast %105 : i32 to index
    %c0_32 = arith.constant 0 : index
    %107 = vector.load %arg11[%106, %c0_32] : memref<72x128xf32, #tpu.memory_space<vmem>>, vector<8x128xf32>
    %cst_33 = arith.constant dense<0.000000e+00> : vector<8x128xf32>
    %108 = tpu.matmul %81, %0, %cst_33 {dimension_numbers = #tpu.dot_dimension_numbers<[1], [0], [0], [1], [0, 0, 1, 1], [], []>} : vector<8x32xf32>, vector<32x128xf32>, vector<8x128xf32> -> vector<8x128xf32>
    %109 = arith.addf %107, %108 : vector<8x128xf32>
    %110 = arith.addf %109, %5 : vector<8x128xf32>
    %111 = vector.extract_strided_slice %110 {offsets = [0, 0], sizes = [8, 96], strides = [1, 1]} : vector<8x128xf32> to vector<8x96xf32>
    %112 = arith.negf %111 : vector<8x96xf32>
    %113 = math.exp %112 : vector<8x96xf32>
    %cst_34 = arith.constant 1.000000e+00 : f32
    %114 = vector.broadcast %cst_34 : f32 to vector<8x96xf32>
    %115 = arith.addf %114, %113 : vector<8x96xf32>
    %116 = arith.divf %114, %115 : vector<8x96xf32>
    %117 = vector.extract_strided_slice %110 {offsets = [0, 96], sizes = [8, 32], strides = [1, 1]} : vector<8x128xf32> to vector<8x32xf32>
    %118 = math.tanh %117 : vector<8x32xf32>
    %119 = vector.extract_strided_slice %116 {offsets = [0, 0], sizes = [8, 32], strides = [1, 1]} : vector<8x96xf32> to vector<8x32xf32>
    %120 = vector.extract_strided_slice %116 {offsets = [0, 32], sizes = [8, 32], strides = [1, 1]} : vector<8x96xf32> to vector<8x32xf32>
    %121 = vector.extract_strided_slice %116 {offsets = [0, 64], sizes = [8, 32], strides = [1, 1]} : vector<8x96xf32> to vector<8x32xf32>
    %122 = arith.mulf %120, %79 : vector<8x32xf32>
    %123 = arith.mulf %119, %118 : vector<8x32xf32>
    %124 = arith.addf %122, %123 : vector<8x32xf32>
    %125 = math.tanh %124 : vector<8x32xf32>
    %126 = arith.mulf %121, %125 : vector<8x32xf32>
    %cst_35 = arith.constant dense<0.000000e+00> : vector<8x128xf32>
    %127 = tpu.matmul %126, %1, %cst_35 {dimension_numbers = #tpu.dot_dimension_numbers<[1], [0], [0], [1], [0, 0, 1, 1], [], []>} : vector<8x32xf32>, vector<32x128xf32>, vector<8x128xf32> -> vector<8x128xf32>
    %cst_36 = arith.constant dense<0.000000e+00> : vector<8x128xf32>
    %128 = tpu.matmul %101, %2, %cst_36 {dimension_numbers = #tpu.dot_dimension_numbers<[1], [0], [0], [1], [0, 0, 1, 1], [], []>} : vector<8x32xf32>, vector<32x128xf32>, vector<8x128xf32> -> vector<8x128xf32>
    %129 = arith.addf %127, %128 : vector<8x128xf32>
    %130 = arith.addf %129, %8 : vector<8x128xf32>
    %131 = vector.extract_strided_slice %130 {offsets = [0, 0], sizes = [8, 96], strides = [1, 1]} : vector<8x128xf32> to vector<8x96xf32>
    %132 = arith.negf %131 : vector<8x96xf32>
    %133 = math.exp %132 : vector<8x96xf32>
    %cst_37 = arith.constant 1.000000e+00 : f32
    %134 = vector.broadcast %cst_37 : f32 to vector<8x96xf32>
    %135 = arith.addf %134, %133 : vector<8x96xf32>
    %136 = arith.divf %134, %135 : vector<8x96xf32>
    %137 = vector.extract_strided_slice %130 {offsets = [0, 96], sizes = [8, 32], strides = [1, 1]} : vector<8x128xf32> to vector<8x32xf32>
    %138 = math.tanh %137 : vector<8x32xf32>
    %139 = vector.extract_strided_slice %136 {offsets = [0, 0], sizes = [8, 32], strides = [1, 1]} : vector<8x96xf32> to vector<8x32xf32>
    %140 = vector.extract_strided_slice %136 {offsets = [0, 32], sizes = [8, 32], strides = [1, 1]} : vector<8x96xf32> to vector<8x32xf32>
    %141 = vector.extract_strided_slice %136 {offsets = [0, 64], sizes = [8, 32], strides = [1, 1]} : vector<8x96xf32> to vector<8x32xf32>
    %142 = arith.mulf %140, %99 : vector<8x32xf32>
    %143 = arith.mulf %139, %138 : vector<8x32xf32>
    %144 = arith.addf %142, %143 : vector<8x32xf32>
    %145 = math.tanh %144 : vector<8x32xf32>
    %146 = arith.mulf %141, %145 : vector<8x32xf32>
    %147 = arith.index_cast %105 : i32 to index
    %c0_38 = arith.constant 0 : index
    %148 = vector.load %arg12[%147, %c0_38] : memref<72x32xf32, #tpu.memory_space<vmem>>, vector<8x32xf32>
    tpu.vector_store %arg12[%147, %c0_38], %146 {strides = array<i32>} : memref<72x32xf32, #tpu.memory_space<vmem>>, vector<8x32xf32>,
    %c3_i32 = arith.constant 3 : i32
    %c8_i32_39 = arith.constant 8 : i32
    %149 = arith.muli %c3_i32, %c8_i32_39 : i32
    %150 = tpu.assume_multiple %149, 8 : i32
    %151 = arith.index_cast %150 : i32 to index
    %c0_40 = arith.constant 0 : index
    %152 = vector.load %arg11[%151, %c0_40] : memref<72x128xf32, #tpu.memory_space<vmem>>, vector<8x128xf32>
    %cst_41 = arith.constant dense<0.000000e+00> : vector<8x128xf32>
    %153 = tpu.matmul %126, %0, %cst_41 {dimension_numbers = #tpu.dot_dimension_numbers<[1], [0], [0], [1], [0, 0, 1, 1], [], []>} : vector<8x32xf32>, vector<32x128xf32>, vector<8x128xf32> -> vector<8x128xf32>
    %154 = arith.addf %152, %153 : vector<8x128xf32>
    %155 = arith.addf %154, %5 : vector<8x128xf32>
    %156 = vector.extract_strided_slice %155 {offsets = [0, 0], sizes = [8, 96], strides = [1, 1]} : vector<8x128xf32> to vector<8x96xf32>
    %157 = arith.negf %156 : vector<8x96xf32>
    %158 = math.exp %157 : vector<8x96xf32>
    %cst_42 = arith.constant 1.000000e+00 : f32
    %159 = vector.broadcast %cst_42 : f32 to vector<8x96xf32>
    %160 = arith.addf %159, %158 : vector<8x96xf32>
    %161 = arith.divf %159, %160 : vector<8x96xf32>
    %162 = vector.extract_strided_slice %155 {offsets = [0, 96], sizes = [8, 32], strides = [1, 1]} : vector<8x128xf32> to vector<8x32xf32>
    %163 = math.tanh %162 : vector<8x32xf32>
    %164 = vector.extract_strided_slice %161 {offsets = [0, 0], sizes = [8, 32], strides = [1, 1]} : vector<8x96xf32> to vector<8x32xf32>
    %165 = vector.extract_strided_slice %161 {offsets = [0, 32], sizes = [8, 32], strides = [1, 1]} : vector<8x96xf32> to vector<8x32xf32>
    %166 = vector.extract_strided_slice %161 {offsets = [0, 64], sizes = [8, 32], strides = [1, 1]} : vector<8x96xf32> to vector<8x32xf32>
    %167 = arith.mulf %165, %124 : vector<8x32xf32>
    %168 = arith.mulf %164, %163 : vector<8x32xf32>
    %169 = arith.addf %167, %168 : vector<8x32xf32>
    %170 = math.tanh %169 : vector<8x32xf32>
    %171 = arith.mulf %166, %170 : vector<8x32xf32>
    %cst_43 = arith.constant dense<0.000000e+00> : vector<8x128xf32>
    %172 = tpu.matmul %171, %1, %cst_43 {dimension_numbers = #tpu.dot_dimension_numbers<[1], [0], [0], [1], [0, 0, 1, 1], [], []>} : vector<8x32xf32>, vector<32x128xf32>, vector<8x128xf32> -> vector<8x128xf32>
    %cst_44 = arith.constant dense<0.000000e+00> : vector<8x128xf32>
    %173 = tpu.matmul %146, %2, %cst_44 {dimension_numbers = #tpu.dot_dimension_numbers<[1], [0], [0], [1], [0, 0, 1, 1], [], []>} : vector<8x32xf32>, vector<32x128xf32>, vector<8x128xf32> -> vector<8x128xf32>
    %174 = arith.addf %172, %173 : vector<8x128xf32>
    %175 = arith.addf %174, %8 : vector<8x128xf32>
    %176 = vector.extract_strided_slice %175 {offsets = [0, 0], sizes = [8, 96], strides = [1, 1]} : vector<8x128xf32> to vector<8x96xf32>
    %177 = arith.negf %176 : vector<8x96xf32>
    %178 = math.exp %177 : vector<8x96xf32>
    %cst_45 = arith.constant 1.000000e+00 : f32
    %179 = vector.broadcast %cst_45 : f32 to vector<8x96xf32>
    %180 = arith.addf %179, %178 : vector<8x96xf32>
    %181 = arith.divf %179, %180 : vector<8x96xf32>
    %182 = vector.extract_strided_slice %175 {offsets = [0, 96], sizes = [8, 32], strides = [1, 1]} : vector<8x128xf32> to vector<8x32xf32>
    %183 = math.tanh %182 : vector<8x32xf32>
    %184 = vector.extract_strided_slice %181 {offsets = [0, 0], sizes = [8, 32], strides = [1, 1]} : vector<8x96xf32> to vector<8x32xf32>
    %185 = vector.extract_strided_slice %181 {offsets = [0, 32], sizes = [8, 32], strides = [1, 1]} : vector<8x96xf32> to vector<8x32xf32>
    %186 = vector.extract_strided_slice %181 {offsets = [0, 64], sizes = [8, 32], strides = [1, 1]} : vector<8x96xf32> to vector<8x32xf32>
    %187 = arith.mulf %185, %144 : vector<8x32xf32>
    %188 = arith.mulf %184, %183 : vector<8x32xf32>
    %189 = arith.addf %187, %188 : vector<8x32xf32>
    %190 = math.tanh %189 : vector<8x32xf32>
    %191 = arith.mulf %186, %190 : vector<8x32xf32>
    %192 = arith.index_cast %150 : i32 to index
    %c0_46 = arith.constant 0 : index
    %193 = vector.load %arg12[%192, %c0_46] : memref<72x32xf32, #tpu.memory_space<vmem>>, vector<8x32xf32>
    tpu.vector_store %arg12[%192, %c0_46], %191 {strides = array<i32>} : memref<72x32xf32, #tpu.memory_space<vmem>>, vector<8x32xf32>,
    %c4_i32 = arith.constant 4 : i32
    %c8_i32_47 = arith.constant 8 : i32
    %194 = arith.muli %c4_i32, %c8_i32_47 : i32
    %195 = tpu.assume_multiple %194, 8 : i32
    %196 = arith.index_cast %195 : i32 to index
    %c0_48 = arith.constant 0 : index
    %197 = vector.load %arg11[%196, %c0_48] : memref<72x128xf32, #tpu.memory_space<vmem>>, vector<8x128xf32>
    %cst_49 = arith.constant dense<0.000000e+00> : vector<8x128xf32>
    %198 = tpu.matmul %171, %0, %cst_49 {dimension_numbers = #tpu.dot_dimension_numbers<[1], [0], [0], [1], [0, 0, 1, 1], [], []>} : vector<8x32xf32>, vector<32x128xf32>, vector<8x128xf32> -> vector<8x128xf32>
    %199 = arith.addf %197, %198 : vector<8x128xf32>
    %200 = arith.addf %199, %5 : vector<8x128xf32>
    %201 = vector.extract_strided_slice %200 {offsets = [0, 0], sizes = [8, 96], strides = [1, 1]} : vector<8x128xf32> to vector<8x96xf32>
    %202 = arith.negf %201 : vector<8x96xf32>
    %203 = math.exp %202 : vector<8x96xf32>
    %cst_50 = arith.constant 1.000000e+00 : f32
    %204 = vector.broadcast %cst_50 : f32 to vector<8x96xf32>
    %205 = arith.addf %204, %203 : vector<8x96xf32>
    %206 = arith.divf %204, %205 : vector<8x96xf32>
    %207 = vector.extract_strided_slice %200 {offsets = [0, 96], sizes = [8, 32], strides = [1, 1]} : vector<8x128xf32> to vector<8x32xf32>
    %208 = math.tanh %207 : vector<8x32xf32>
    %209 = vector.extract_strided_slice %206 {offsets = [0, 0], sizes = [8, 32], strides = [1, 1]} : vector<8x96xf32> to vector<8x32xf32>
    %210 = vector.extract_strided_slice %206 {offsets = [0, 32], sizes = [8, 32], strides = [1, 1]} : vector<8x96xf32> to vector<8x32xf32>
    %211 = vector.extract_strided_slice %206 {offsets = [0, 64], sizes = [8, 32], strides = [1, 1]} : vector<8x96xf32> to vector<8x32xf32>
    %212 = arith.mulf %210, %169 : vector<8x32xf32>
    %213 = arith.mulf %209, %208 : vector<8x32xf32>
    %214 = arith.addf %212, %213 : vector<8x32xf32>
    %215 = math.tanh %214 : vector<8x32xf32>
    %216 = arith.mulf %211, %215 : vector<8x32xf32>
    %cst_51 = arith.constant dense<0.000000e+00> : vector<8x128xf32>
    %217 = tpu.matmul %216, %1, %cst_51 {dimension_numbers = #tpu.dot_dimension_numbers<[1], [0], [0], [1], [0, 0, 1, 1], [], []>} : vector<8x32xf32>, vector<32x128xf32>, vector<8x128xf32> -> vector<8x128xf32>
    %cst_52 = arith.constant dense<0.000000e+00> : vector<8x128xf32>
    %218 = tpu.matmul %191, %2, %cst_52 {dimension_numbers = #tpu.dot_dimension_numbers<[1], [0], [0], [1], [0, 0, 1, 1], [], []>} : vector<8x32xf32>, vector<32x128xf32>, vector<8x128xf32> -> vector<8x128xf32>
    %219 = arith.addf %217, %218 : vector<8x128xf32>
    %220 = arith.addf %219, %8 : vector<8x128xf32>
    %221 = vector.extract_strided_slice %220 {offsets = [0, 0], sizes = [8, 96], strides = [1, 1]} : vector<8x128xf32> to vector<8x96xf32>
    %222 = arith.negf %221 : vector<8x96xf32>
    %223 = math.exp %222 : vector<8x96xf32>
    %cst_53 = arith.constant 1.000000e+00 : f32
    %224 = vector.broadcast %cst_53 : f32 to vector<8x96xf32>
    %225 = arith.addf %224, %223 : vector<8x96xf32>
    %226 = arith.divf %224, %225 : vector<8x96xf32>
    %227 = vector.extract_strided_slice %220 {offsets = [0, 96], sizes = [8, 32], strides = [1, 1]} : vector<8x128xf32> to vector<8x32xf32>
    %228 = math.tanh %227 : vector<8x32xf32>
    %229 = vector.extract_strided_slice %226 {offsets = [0, 0], sizes = [8, 32], strides = [1, 1]} : vector<8x96xf32> to vector<8x32xf32>
    %230 = vector.extract_strided_slice %226 {offsets = [0, 32], sizes = [8, 32], strides = [1, 1]} : vector<8x96xf32> to vector<8x32xf32>
    %231 = vector.extract_strided_slice %226 {offsets = [0, 64], sizes = [8, 32], strides = [1, 1]} : vector<8x96xf32> to vector<8x32xf32>
    %232 = arith.mulf %230, %189 : vector<8x32xf32>
    %233 = arith.mulf %229, %228 : vector<8x32xf32>
    %234 = arith.addf %232, %233 : vector<8x32xf32>
    %235 = math.tanh %234 : vector<8x32xf32>
    %236 = arith.mulf %231, %235 : vector<8x32xf32>
    %237 = arith.index_cast %195 : i32 to index
    %c0_54 = arith.constant 0 : index
    %238 = vector.load %arg12[%237, %c0_54] : memref<72x32xf32, #tpu.memory_space<vmem>>, vector<8x32xf32>
    tpu.vector_store %arg12[%237, %c0_54], %236 {strides = array<i32>} : memref<72x32xf32, #tpu.memory_space<vmem>>, vector<8x32xf32>,
    %c5_i32 = arith.constant 5 : i32
    %c8_i32_55 = arith.constant 8 : i32
    %239 = arith.muli %c5_i32, %c8_i32_55 : i32
    %240 = tpu.assume_multiple %239, 8 : i32
    %241 = arith.index_cast %240 : i32 to index
    %c0_56 = arith.constant 0 : index
    %242 = vector.load %arg11[%241, %c0_56] : memref<72x128xf32, #tpu.memory_space<vmem>>, vector<8x128xf32>
    %cst_57 = arith.constant dense<0.000000e+00> : vector<8x128xf32>
    %243 = tpu.matmul %216, %0, %cst_57 {dimension_numbers = #tpu.dot_dimension_numbers<[1], [0], [0], [1], [0, 0, 1, 1], [], []>} : vector<8x32xf32>, vector<32x128xf32>, vector<8x128xf32> -> vector<8x128xf32>
    %244 = arith.addf %242, %243 : vector<8x128xf32>
    %245 = arith.addf %244, %5 : vector<8x128xf32>
    %246 = vector.extract_strided_slice %245 {offsets = [0, 0], sizes = [8, 96], strides = [1, 1]} : vector<8x128xf32> to vector<8x96xf32>
    %247 = arith.negf %246 : vector<8x96xf32>
    %248 = math.exp %247 : vector<8x96xf32>
    %cst_58 = arith.constant 1.000000e+00 : f32
    %249 = vector.broadcast %cst_58 : f32 to vector<8x96xf32>
    %250 = arith.addf %249, %248 : vector<8x96xf32>
    %251 = arith.divf %249, %250 : vector<8x96xf32>
    %252 = vector.extract_strided_slice %245 {offsets = [0, 96], sizes = [8, 32], strides = [1, 1]} : vector<8x128xf32> to vector<8x32xf32>
    %253 = math.tanh %252 : vector<8x32xf32>
    %254 = vector.extract_strided_slice %251 {offsets = [0, 0], sizes = [8, 32], strides = [1, 1]} : vector<8x96xf32> to vector<8x32xf32>
    %255 = vector.extract_strided_slice %251 {offsets = [0, 32], sizes = [8, 32], strides = [1, 1]} : vector<8x96xf32> to vector<8x32xf32>
    %256 = vector.extract_strided_slice %251 {offsets = [0, 64], sizes = [8, 32], strides = [1, 1]} : vector<8x96xf32> to vector<8x32xf32>
    %257 = arith.mulf %255, %214 : vector<8x32xf32>
    %258 = arith.mulf %254, %253 : vector<8x32xf32>
    %259 = arith.addf %257, %258 : vector<8x32xf32>
    %260 = math.tanh %259 : vector<8x32xf32>
    %261 = arith.mulf %256, %260 : vector<8x32xf32>
    %cst_59 = arith.constant dense<0.000000e+00> : vector<8x128xf32>
    %262 = tpu.matmul %261, %1, %cst_59 {dimension_numbers = #tpu.dot_dimension_numbers<[1], [0], [0], [1], [0, 0, 1, 1], [], []>} : vector<8x32xf32>, vector<32x128xf32>, vector<8x128xf32> -> vector<8x128xf32>
    %cst_60 = arith.constant dense<0.000000e+00> : vector<8x128xf32>
    %263 = tpu.matmul %236, %2, %cst_60 {dimension_numbers = #tpu.dot_dimension_numbers<[1], [0], [0], [1], [0, 0, 1, 1], [], []>} : vector<8x32xf32>, vector<32x128xf32>, vector<8x128xf32> -> vector<8x128xf32>
    %264 = arith.addf %262, %263 : vector<8x128xf32>
    %265 = arith.addf %264, %8 : vector<8x128xf32>
    %266 = vector.extract_strided_slice %265 {offsets = [0, 0], sizes = [8, 96], strides = [1, 1]} : vector<8x128xf32> to vector<8x96xf32>
    %267 = arith.negf %266 : vector<8x96xf32>
    %268 = math.exp %267 : vector<8x96xf32>
    %cst_61 = arith.constant 1.000000e+00 : f32
    %269 = vector.broadcast %cst_61 : f32 to vector<8x96xf32>
    %270 = arith.addf %269, %268 : vector<8x96xf32>
    %271 = arith.divf %269, %270 : vector<8x96xf32>
    %272 = vector.extract_strided_slice %265 {offsets = [0, 96], sizes = [8, 32], strides = [1, 1]} : vector<8x128xf32> to vector<8x32xf32>
    %273 = math.tanh %272 : vector<8x32xf32>
    %274 = vector.extract_strided_slice %271 {offsets = [0, 0], sizes = [8, 32], strides = [1, 1]} : vector<8x96xf32> to vector<8x32xf32>
    %275 = vector.extract_strided_slice %271 {offsets = [0, 32], sizes = [8, 32], strides = [1, 1]} : vector<8x96xf32> to vector<8x32xf32>
    %276 = vector.extract_strided_slice %271 {offsets = [0, 64], sizes = [8, 32], strides = [1, 1]} : vector<8x96xf32> to vector<8x32xf32>
    %277 = arith.mulf %275, %234 : vector<8x32xf32>
    %278 = arith.mulf %274, %273 : vector<8x32xf32>
    %279 = arith.addf %277, %278 : vector<8x32xf32>
    %280 = math.tanh %279 : vector<8x32xf32>
    %281 = arith.mulf %276, %280 : vector<8x32xf32>
    %282 = arith.index_cast %240 : i32 to index
    %c0_62 = arith.constant 0 : index
    %283 = vector.load %arg12[%282, %c0_62] : memref<72x32xf32, #tpu.memory_space<vmem>>, vector<8x32xf32>
    tpu.vector_store %arg12[%282, %c0_62], %281 {strides = array<i32>} : memref<72x32xf32, #tpu.memory_space<vmem>>, vector<8x32xf32>,
    %c6_i32 = arith.constant 6 : i32
    %c8_i32_63 = arith.constant 8 : i32
    %284 = arith.muli %c6_i32, %c8_i32_63 : i32
    %285 = tpu.assume_multiple %284, 8 : i32
    %286 = arith.index_cast %285 : i32 to index
    %c0_64 = arith.constant 0 : index
    %287 = vector.load %arg11[%286, %c0_64] : memref<72x128xf32, #tpu.memory_space<vmem>>, vector<8x128xf32>
    %cst_65 = arith.constant dense<0.000000e+00> : vector<8x128xf32>
    %288 = tpu.matmul %261, %0, %cst_65 {dimension_numbers = #tpu.dot_dimension_numbers<[1], [0], [0], [1], [0, 0, 1, 1], [], []>} : vector<8x32xf32>, vector<32x128xf32>, vector<8x128xf32> -> vector<8x128xf32>
    %289 = arith.addf %287, %288 : vector<8x128xf32>
    %290 = arith.addf %289, %5 : vector<8x128xf32>
    %291 = vector.extract_strided_slice %290 {offsets = [0, 0], sizes = [8, 96], strides = [1, 1]} : vector<8x128xf32> to vector<8x96xf32>
    %292 = arith.negf %291 : vector<8x96xf32>
    %293 = math.exp %292 : vector<8x96xf32>
    %cst_66 = arith.constant 1.000000e+00 : f32
    %294 = vector.broadcast %cst_66 : f32 to vector<8x96xf32>
    %295 = arith.addf %294, %293 : vector<8x96xf32>
    %296 = arith.divf %294, %295 : vector<8x96xf32>
    %297 = vector.extract_strided_slice %290 {offsets = [0, 96], sizes = [8, 32], strides = [1, 1]} : vector<8x128xf32> to vector<8x32xf32>
    %298 = math.tanh %297 : vector<8x32xf32>
    %299 = vector.extract_strided_slice %296 {offsets = [0, 0], sizes = [8, 32], strides = [1, 1]} : vector<8x96xf32> to vector<8x32xf32>
    %300 = vector.extract_strided_slice %296 {offsets = [0, 32], sizes = [8, 32], strides = [1, 1]} : vector<8x96xf32> to vector<8x32xf32>
    %301 = vector.extract_strided_slice %296 {offsets = [0, 64], sizes = [8, 32], strides = [1, 1]} : vector<8x96xf32> to vector<8x32xf32>
    %302 = arith.mulf %300, %259 : vector<8x32xf32>
    %303 = arith.mulf %299, %298 : vector<8x32xf32>
    %304 = arith.addf %302, %303 : vector<8x32xf32>
    %305 = math.tanh %304 : vector<8x32xf32>
    %306 = arith.mulf %301, %305 : vector<8x32xf32>
    %cst_67 = arith.constant dense<0.000000e+00> : vector<8x128xf32>
    %307 = tpu.matmul %306, %1, %cst_67 {dimension_numbers = #tpu.dot_dimension_numbers<[1], [0], [0], [1], [0, 0, 1, 1], [], []>} : vector<8x32xf32>, vector<32x128xf32>, vector<8x128xf32> -> vector<8x128xf32>
    %cst_68 = arith.constant dense<0.000000e+00> : vector<8x128xf32>
    %308 = tpu.matmul %281, %2, %cst_68 {dimension_numbers = #tpu.dot_dimension_numbers<[1], [0], [0], [1], [0, 0, 1, 1], [], []>} : vector<8x32xf32>, vector<32x128xf32>, vector<8x128xf32> -> vector<8x128xf32>
    %309 = arith.addf %307, %308 : vector<8x128xf32>
    %310 = arith.addf %309, %8 : vector<8x128xf32>
    %311 = vector.extract_strided_slice %310 {offsets = [0, 0], sizes = [8, 96], strides = [1, 1]} : vector<8x128xf32> to vector<8x96xf32>
    %312 = arith.negf %311 : vector<8x96xf32>
    %313 = math.exp %312 : vector<8x96xf32>
    %cst_69 = arith.constant 1.000000e+00 : f32
    %314 = vector.broadcast %cst_69 : f32 to vector<8x96xf32>
    %315 = arith.addf %314, %313 : vector<8x96xf32>
    %316 = arith.divf %314, %315 : vector<8x96xf32>
    %317 = vector.extract_strided_slice %310 {offsets = [0, 96], sizes = [8, 32], strides = [1, 1]} : vector<8x128xf32> to vector<8x32xf32>
    %318 = math.tanh %317 : vector<8x32xf32>
    %319 = vector.extract_strided_slice %316 {offsets = [0, 0], sizes = [8, 32], strides = [1, 1]} : vector<8x96xf32> to vector<8x32xf32>
    %320 = vector.extract_strided_slice %316 {offsets = [0, 32], sizes = [8, 32], strides = [1, 1]} : vector<8x96xf32> to vector<8x32xf32>
    %321 = vector.extract_strided_slice %316 {offsets = [0, 64], sizes = [8, 32], strides = [1, 1]} : vector<8x96xf32> to vector<8x32xf32>
    %322 = arith.mulf %320, %279 : vector<8x32xf32>
    %323 = arith.mulf %319, %318 : vector<8x32xf32>
    %324 = arith.addf %322, %323 : vector<8x32xf32>
    %325 = math.tanh %324 : vector<8x32xf32>
    %326 = arith.mulf %321, %325 : vector<8x32xf32>
    %327 = arith.index_cast %285 : i32 to index
    %c0_70 = arith.constant 0 : index
    %328 = vector.load %arg12[%327, %c0_70] : memref<72x32xf32, #tpu.memory_space<vmem>>, vector<8x32xf32>
    tpu.vector_store %arg12[%327, %c0_70], %326 {strides = array<i32>} : memref<72x32xf32, #tpu.memory_space<vmem>>, vector<8x32xf32>,
    %c7_i32 = arith.constant 7 : i32
    %c8_i32_71 = arith.constant 8 : i32
    %329 = arith.muli %c7_i32, %c8_i32_71 : i32
    %330 = tpu.assume_multiple %329, 8 : i32
    %331 = arith.index_cast %330 : i32 to index
    %c0_72 = arith.constant 0 : index
    %332 = vector.load %arg11[%331, %c0_72] : memref<72x128xf32, #tpu.memory_space<vmem>>, vector<8x128xf32>
    %cst_73 = arith.constant dense<0.000000e+00> : vector<8x128xf32>
    %333 = tpu.matmul %306, %0, %cst_73 {dimension_numbers = #tpu.dot_dimension_numbers<[1], [0], [0], [1], [0, 0, 1, 1], [], []>} : vector<8x32xf32>, vector<32x128xf32>, vector<8x128xf32> -> vector<8x128xf32>
    %334 = arith.addf %332, %333 : vector<8x128xf32>
    %335 = arith.addf %334, %5 : vector<8x128xf32>
    %336 = vector.extract_strided_slice %335 {offsets = [0, 0], sizes = [8, 96], strides = [1, 1]} : vector<8x128xf32> to vector<8x96xf32>
    %337 = arith.negf %336 : vector<8x96xf32>
    %338 = math.exp %337 : vector<8x96xf32>
    %cst_74 = arith.constant 1.000000e+00 : f32
    %339 = vector.broadcast %cst_74 : f32 to vector<8x96xf32>
    %340 = arith.addf %339, %338 : vector<8x96xf32>
    %341 = arith.divf %339, %340 : vector<8x96xf32>
    %342 = vector.extract_strided_slice %335 {offsets = [0, 96], sizes = [8, 32], strides = [1, 1]} : vector<8x128xf32> to vector<8x32xf32>
    %343 = math.tanh %342 : vector<8x32xf32>
    %344 = vector.extract_strided_slice %341 {offsets = [0, 0], sizes = [8, 32], strides = [1, 1]} : vector<8x96xf32> to vector<8x32xf32>
    %345 = vector.extract_strided_slice %341 {offsets = [0, 32], sizes = [8, 32], strides = [1, 1]} : vector<8x96xf32> to vector<8x32xf32>
    %346 = vector.extract_strided_slice %341 {offsets = [0, 64], sizes = [8, 32], strides = [1, 1]} : vector<8x96xf32> to vector<8x32xf32>
    %347 = arith.mulf %345, %304 : vector<8x32xf32>
    %348 = arith.mulf %344, %343 : vector<8x32xf32>
    %349 = arith.addf %347, %348 : vector<8x32xf32>
    %350 = math.tanh %349 : vector<8x32xf32>
    %351 = arith.mulf %346, %350 : vector<8x32xf32>
    %cst_75 = arith.constant dense<0.000000e+00> : vector<8x128xf32>
    %352 = tpu.matmul %351, %1, %cst_75 {dimension_numbers = #tpu.dot_dimension_numbers<[1], [0], [0], [1], [0, 0, 1, 1], [], []>} : vector<8x32xf32>, vector<32x128xf32>, vector<8x128xf32> -> vector<8x128xf32>
    %cst_76 = arith.constant dense<0.000000e+00> : vector<8x128xf32>
    %353 = tpu.matmul %326, %2, %cst_76 {dimension_numbers = #tpu.dot_dimension_numbers<[1], [0], [0], [1], [0, 0, 1, 1], [], []>} : vector<8x32xf32>, vector<32x128xf32>, vector<8x128xf32> -> vector<8x128xf32>
    %354 = arith.addf %352, %353 : vector<8x128xf32>
    %355 = arith.addf %354, %8 : vector<8x128xf32>
    %356 = vector.extract_strided_slice %355 {offsets = [0, 0], sizes = [8, 96], strides = [1, 1]} : vector<8x128xf32> to vector<8x96xf32>
    %357 = arith.negf %356 : vector<8x96xf32>
    %358 = math.exp %357 : vector<8x96xf32>
    %cst_77 = arith.constant 1.000000e+00 : f32
    %359 = vector.broadcast %cst_77 : f32 to vector<8x96xf32>
    %360 = arith.addf %359, %358 : vector<8x96xf32>
    %361 = arith.divf %359, %360 : vector<8x96xf32>
    %362 = vector.extract_strided_slice %355 {offsets = [0, 96], sizes = [8, 32], strides = [1, 1]} : vector<8x128xf32> to vector<8x32xf32>
    %363 = math.tanh %362 : vector<8x32xf32>
    %364 = vector.extract_strided_slice %361 {offsets = [0, 0], sizes = [8, 32], strides = [1, 1]} : vector<8x96xf32> to vector<8x32xf32>
    %365 = vector.extract_strided_slice %361 {offsets = [0, 32], sizes = [8, 32], strides = [1, 1]} : vector<8x96xf32> to vector<8x32xf32>
    %366 = vector.extract_strided_slice %361 {offsets = [0, 64], sizes = [8, 32], strides = [1, 1]} : vector<8x96xf32> to vector<8x32xf32>
    %367 = arith.mulf %365, %324 : vector<8x32xf32>
    %368 = arith.mulf %364, %363 : vector<8x32xf32>
    %369 = arith.addf %367, %368 : vector<8x32xf32>
    %370 = math.tanh %369 : vector<8x32xf32>
    %371 = arith.mulf %366, %370 : vector<8x32xf32>
    %372 = arith.index_cast %330 : i32 to index
    %c0_78 = arith.constant 0 : index
    %373 = vector.load %arg12[%372, %c0_78] : memref<72x32xf32, #tpu.memory_space<vmem>>, vector<8x32xf32>
    tpu.vector_store %arg12[%372, %c0_78], %371 {strides = array<i32>} : memref<72x32xf32, #tpu.memory_space<vmem>>, vector<8x32xf32>,
    %c8_i32_79 = arith.constant 8 : i32
    %c8_i32_80 = arith.constant 8 : i32
    %374 = arith.muli %c8_i32_79, %c8_i32_80 : i32
    %375 = tpu.assume_multiple %374, 8 : i32
    %376 = arith.index_cast %375 : i32 to index
    %c0_81 = arith.constant 0 : index
    %377 = vector.load %arg11[%376, %c0_81] : memref<72x128xf32, #tpu.memory_space<vmem>>, vector<8x128xf32>
    %cst_82 = arith.constant dense<0.000000e+00> : vector<8x128xf32>
    %378 = tpu.matmul %351, %0, %cst_82 {dimension_numbers = #tpu.dot_dimension_numbers<[1], [0], [0], [1], [0, 0, 1, 1], [], []>} : vector<8x32xf32>, vector<32x128xf32>, vector<8x128xf32> -> vector<8x128xf32>
    %379 = arith.addf %377, %378 : vector<8x128xf32>
    %380 = arith.addf %379, %5 : vector<8x128xf32>
    %381 = vector.extract_strided_slice %380 {offsets = [0, 0], sizes = [8, 96], strides = [1, 1]} : vector<8x128xf32> to vector<8x96xf32>
    %382 = arith.negf %381 : vector<8x96xf32>
    %383 = math.exp %382 : vector<8x96xf32>
    %cst_83 = arith.constant 1.000000e+00 : f32
    %384 = vector.broadcast %cst_83 : f32 to vector<8x96xf32>
    %385 = arith.addf %384, %383 : vector<8x96xf32>
    %386 = arith.divf %384, %385 : vector<8x96xf32>
    %387 = vector.extract_strided_slice %380 {offsets = [0, 96], sizes = [8, 32], strides = [1, 1]} : vector<8x128xf32> to vector<8x32xf32>
    %388 = math.tanh %387 : vector<8x32xf32>
    %389 = vector.extract_strided_slice %386 {offsets = [0, 0], sizes = [8, 32], strides = [1, 1]} : vector<8x96xf32> to vector<8x32xf32>
    %390 = vector.extract_strided_slice %386 {offsets = [0, 32], sizes = [8, 32], strides = [1, 1]} : vector<8x96xf32> to vector<8x32xf32>
    %391 = vector.extract_strided_slice %386 {offsets = [0, 64], sizes = [8, 32], strides = [1, 1]} : vector<8x96xf32> to vector<8x32xf32>
    %392 = arith.mulf %390, %349 : vector<8x32xf32>
    %393 = arith.mulf %389, %388 : vector<8x32xf32>
    %394 = arith.addf %392, %393 : vector<8x32xf32>
    %395 = math.tanh %394 : vector<8x32xf32>
    %396 = arith.mulf %391, %395 : vector<8x32xf32>
    %cst_84 = arith.constant dense<0.000000e+00> : vector<8x128xf32>
    %397 = tpu.matmul %396, %1, %cst_84 {dimension_numbers = #tpu.dot_dimension_numbers<[1], [0], [0], [1], [0, 0, 1, 1], [], []>} : vector<8x32xf32>, vector<32x128xf32>, vector<8x128xf32> -> vector<8x128xf32>
    %cst_85 = arith.constant dense<0.000000e+00> : vector<8x128xf32>
    %398 = tpu.matmul %371, %2, %cst_85 {dimension_numbers = #tpu.dot_dimension_numbers<[1], [0], [0], [1], [0, 0, 1, 1], [], []>} : vector<8x32xf32>, vector<32x128xf32>, vector<8x128xf32> -> vector<8x128xf32>
    %399 = arith.addf %397, %398 : vector<8x128xf32>
    %400 = arith.addf %399, %8 : vector<8x128xf32>
    %401 = vector.extract_strided_slice %400 {offsets = [0, 0], sizes = [8, 96], strides = [1, 1]} : vector<8x128xf32> to vector<8x96xf32>
    %402 = arith.negf %401 : vector<8x96xf32>
    %403 = math.exp %402 : vector<8x96xf32>
    %cst_86 = arith.constant 1.000000e+00 : f32
    %404 = vector.broadcast %cst_86 : f32 to vector<8x96xf32>
    %405 = arith.addf %404, %403 : vector<8x96xf32>
    %406 = arith.divf %404, %405 : vector<8x96xf32>
    %407 = vector.extract_strided_slice %400 {offsets = [0, 96], sizes = [8, 32], strides = [1, 1]} : vector<8x128xf32> to vector<8x32xf32>
    %408 = math.tanh %407 : vector<8x32xf32>
    %409 = vector.extract_strided_slice %406 {offsets = [0, 0], sizes = [8, 32], strides = [1, 1]} : vector<8x96xf32> to vector<8x32xf32>
    %410 = vector.extract_strided_slice %406 {offsets = [0, 32], sizes = [8, 32], strides = [1, 1]} : vector<8x96xf32> to vector<8x32xf32>
    %411 = vector.extract_strided_slice %406 {offsets = [0, 64], sizes = [8, 32], strides = [1, 1]} : vector<8x96xf32> to vector<8x32xf32>
    %412 = arith.mulf %410, %369 : vector<8x32xf32>
    %413 = arith.mulf %409, %408 : vector<8x32xf32>
    %414 = arith.addf %412, %413 : vector<8x32xf32>
    %415 = math.tanh %414 : vector<8x32xf32>
    %416 = arith.mulf %411, %415 : vector<8x32xf32>
    %417 = arith.index_cast %375 : i32 to index
    %c0_87 = arith.constant 0 : index
    %418 = vector.load %arg12[%417, %c0_87] : memref<72x32xf32, #tpu.memory_space<vmem>>, vector<8x32xf32>
    tpu.vector_store %arg12[%417, %c0_87], %416 {strides = array<i32>} : memref<72x32xf32, #tpu.memory_space<vmem>>, vector<8x32xf32>,
    %c9_i32 = arith.constant 9 : i32
    %c0_88 = arith.constant 0 : index
    %c0_89 = arith.constant 0 : index
    %419 = vector.load %arg12[%c0_88, %c0_89] : memref<72x32xf32, #tpu.memory_space<vmem>>, vector<72x32xf32>
    %c0_90 = arith.constant 0 : index
    %c0_91 = arith.constant 0 : index
    %420 = vector.load %arg8[%c0_90, %c0_91] : memref<32x128xf32, #tpu.memory_space<vmem>>, vector<32x128xf32>
    %cst_92 = arith.constant dense<0.000000e+00> : vector<72x128xf32>
    %421 = tpu.matmul %419, %420, %cst_92 {dimension_numbers = #tpu.dot_dimension_numbers<[1], [0], [0], [1], [0, 0, 1, 1], [], []>} : vector<72x32xf32>, vector<32x128xf32>, vector<72x128xf32> -> vector<72x128xf32>
    %c0_93 = arith.constant 0 : index
    %c0_94 = arith.constant 0 : index
    %422 = vector.load %arg9[%c0_93, %c0_94] : memref<1x128xf32, #tpu.memory_space<vmem>>, vector<1x128xf32>
    %423 = vector.shape_cast %422 : vector<1x128xf32> to vector<1x128xf32>
    %424 = vector.broadcast %423 : vector<1x128xf32> to vector<72x128xf32>
    %425 = arith.addf %421, %424 : vector<72x128xf32>
    %c0_95 = arith.constant 0 : index
    %c0_96 = arith.constant 0 : index
    %426 = vector.load %arg10[%c0_95, %c0_96] : memref<72x128xf32, #tpu.memory_space<vmem>>, vector<72x128xf32>
    tpu.vector_store %arg10[%c0_95, %c0_96], %425 {strides = array<i32>} : memref<72x128xf32, #tpu.memory_space<vmem>>, vector<72x128xf32>,
    return
  }
  func.func @transform_0(%arg0: i32) -> (i32, i32) {
    %c0_i32 = arith.constant 0 : i32
    %c0_i32_0 = arith.constant 0 : i32
    %c0_i32_1 = arith.constant 0 : i32
    return %c0_i32, %c0_i32_0 : i32, i32
  }
  func.func @transform_1(%arg0: i32) -> (i32, i32) {
    %c0_i32 = arith.constant 0 : i32
    %c0_i32_0 = arith.constant 0 : i32
    %c0_i32_1 = arith.constant 0 : i32
    return %c0_i32, %c0_i32_0 : i32, i32
  }
  func.func @transform_2(%arg0: i32) -> (i32, i32) {
    %c0_i32 = arith.constant 0 : i32
    %c0_i32_0 = arith.constant 0 : i32
    %c0_i32_1 = arith.constant 0 : i32
    return %c0_i32, %c0_i32_0 : i32, i32
  }
  func.func @transform_3(%arg0: i32) -> (i32, i32) {
    %c0_i32 = arith.constant 0 : i32
    %c0_i32_0 = arith.constant 0 : i32
    %c0_i32_1 = arith.constant 0 : i32
    return %c0_i32, %c0_i32_0 : i32, i32
  }
  func.func @transform_4(%arg0: i32) -> (i32, i32) {
    %c0_i32 = arith.constant 0 : i32
    %c0_i32_0 = arith.constant 0 : i32
    %c0_i32_1 = arith.constant 0 : i32
    return %c0_i32, %c0_i32_0 : i32, i32
  }
  func.func @transform_5(%arg0: i32) -> (i32, i32) {
    %c0_i32 = arith.constant 0 : i32
    %c0_i32_0 = arith.constant 0 : i32
    %c0_i32_1 = arith.constant 0 : i32
    return %c0_i32, %c0_i32_0 : i32, i32
  }
  func.func @transform_6(%arg0: i32) -> (i32, i32) {
    %c0_i32 = arith.constant 0 : i32
    %c0_i32_0 = arith.constant 0 : i32
    %c0_i32_1 = arith.constant 0 : i32
    return %c0_i32, %c0_i32_0 : i32, i32
  }
  func.func @transform_7(%arg0: i32) -> (i32, i32) {
    %c0_i32 = arith.constant 0 : i32
    %c0_i32_0 = arith.constant 0 : i32
    %c0_i32_1 = arith.constant 0 : i32
    return %c0_i32, %c0_i32_0 : i32, i32
  }
  func.func @transform_8(%arg0: i32) -> (i32, i32) {
    %c0_i32 = arith.constant 0 : i32
    %c0_i32_0 = arith.constant 0 : i32
    %c0_i32_1 = arith.constant 0 : i32
    return %c0_i32, %c0_i32_0 : i32, i32
  }
  func.func @transform_9(%arg0: i32) -> (i32, i32) {
    %c0_i32 = arith.constant 0 : i32
    %c0_i32_0 = arith.constant 0 : i32
    %c0_i32_1 = arith.constant 0 : i32
    return %c0_i32, %c0_i32_0 : i32, i32
  }
}

</mosaic_0001>

<bundles_post_ra>
// kernel: tpu_custom_call.1
= control target key start
LH: loop header
LB: loop body
LE: loop exit
PB: predicated region body
PF: predicated region fallthrough
CT: control target
= control target key end

     0   :  { %14 = vsyncpa [#allocation5], 0  ;;  %s4539_s0 = inlined_call_operand.vmem [shape: f32[72,24], index: 0, kind: input, shape index: {}]   ;;  %s4540_s1 = inlined_call_operand.hbm [shape: f32[24,128], index: 1, kind: input, shape index: {}]   ;;  %s4541_s2 = inlined_call_operand.vmem [shape: f32[32,128], index: 2, kind: input, shape index: {}]   ;;  %s4542_s3 = inlined_call_operand.vmem [shape: f32[1,128], index: 3, kind: input, shape index: {}]   ;;  %s4543_s4 = inlined_call_operand.vmem [shape: f32[32,128], index: 4, kind: input, shape index: {}]   ;;  %s4544_s5 = inlined_call_operand.vmem [shape: f32[32,128], index: 5, kind: input, shape index: {}]   ;;  %s4545_s6 = inlined_call_operand.vmem [shape: f32[1,128], index: 6, kind: input, shape index: {}]   ;;  %s4546_s7 = inlined_call_operand.hbm [shape: f32[32,128], index: 7, kind: input, shape index: {}]   ;;  %s4547_s8 = inlined_call_operand.vmem [shape: f32[1,128], index: 8, kind: input, shape index: {}]   ;;  %s4548_s9 = inlined_call_operand.hbm [shape: f32[72,128], index: 9, kind: output, shape index: {}]  }
   0x1   :  { %15 = vsyncpa [#allocation8], 0 }
   0x2   :  { %16 = vsyncpa [#allocation6], 0  ;;  %s3906_s30 = smov [#allocation4]   ;;  %s3834_s13 = scalar_lea.hbm %s4540_s1, 384 }
   0x3   :  { %s24_s10 = sshll.u32 %s3906_s30, 4  ;;  %p3835_p0 = scmp.ne.s32.totalorder %s4540_s1, %s3834_s13  ;;  %s25_s10 = int_to_ptr.vmem [resolvable:$true] %s24_s10 }
   0x4   :  { %p3838_p1 = scmp.lt.u32.totalorder %s3834_s13, %s4540_s1 }
   0x6   :  { %p3840_p2 = pnand %p3838_p1, %p3835_p0 }
   0x8   :  { %3843 = shalt.err (!%p3840_p2)
}
   0x9   :  { %s3844_s18 = scalar_lea.vmem %s25_s10, 384  ;;  %p3849_p4 = scmp.lt.s32.totalorder %s25_s10, %s25_s10 }
   0xa   :  { %p3845_p3 = scmp.ne.s32.totalorder %s25_s10, %s3844_s18  ;;  %p3850_p5 = scmp.lt.s32.totalorder %s3844_s18, %s3844_s18 }
   0xc   :  { %p3851_p6 = por %p3850_p5, %p3849_p4 }
   0xe   :  { %p3852_p7 = pnand %p3851_p6, %p3845_p3 }
  0x10   :  { %3855 = shalt.err (!%p3852_p7)
}
  0x11   :  { %s3907_s19 = smov 128   ;;  %s3908_s20 = smov 8  }
  0x12   :  { %30 = dma.hbm_to_vmem [thread:$0]  %s4540_s1, 384, %s25_s10, [#allocation5], %s3907_s19, %s3907_s19, %s3908_s20  }
  0x13   :  { %s3909_s23 = smov [#allocation7]   ;;  %s3856_s27 = scalar_lea.hbm %s4546_s7, 512 }
  0x14   :  { %s46_s24 = sshll.u32 %s3909_s23, 4  ;;  %p3857_p8 = scmp.ne.s32.totalorder %s4546_s7, %s3856_s27  ;;  %s47_s24 = int_to_ptr.vmem [resolvable:$true] %s46_s24 }
  0x15   :  { %p3860_p9 = scmp.lt.u32.totalorder %s3856_s27, %s4546_s7 }
  0x17   :  { %p3862_p10 = pnand %p3860_p9, %p3857_p8 }
  0x19   :  { %3865 = shalt.err (!%p3862_p10)
}
  0x1a   :  { %s3866_s12 = scalar_lea.vmem %s47_s24, 512  ;;  %p3871_p12 = scmp.lt.s32.totalorder %s47_s24, %s47_s24 }
  0x1b   :  { %p3867_p11 = scmp.ne.s32.totalorder %s47_s24, %s3866_s12  ;;  %p3872_p13 = scmp.lt.s32.totalorder %s3866_s12, %s3866_s12 }
  0x1d   :  { %p3873_p0 = por %p3872_p13, %p3871_p12 }
  0x1f   :  { %p3874_p1 = pnand %p3873_p0, %p3867_p11 }
  0x21   :  { %3877 = shalt.err (!%p3874_p1)
}
  0x22   :  { %52 = dma.hbm_to_vmem [thread:$0]  %s4546_s7, 512, %s47_s24, [#allocation8], %s3907_s19, %s3907_s19, %s3908_s20  }
  0x23   :  { %3900 = dma.done.wait [#allocation5], 384  }
  0x24   :  { %3901 = vsyncadd [#allocation5], 4294966912 }
  0x25   :  { %3902 = dma.done.wait [#allocation8], 512  }
  0x26   :  { %3903 = vsyncadd [#allocation8], 4294966784  ;;  %v3910_v0 = vmov 0.0|0.0   ;;  %vm3911_vm0 = vmmov 0   ;;  %v3912_v1 = vmov 0.0   ;;  %v96_v2 = vld [vmem:[#allocation4] sm:$0xff] }
  0x27   :  { %3674 = vmatprep.subr.bf16.mxu1 %v3910_v0  ;;  %3159 = vmatprep.mubr.msk.f32.mxu1 %vm3911_vm0, %v3912_v1  ;;  %v97_v3 = vld [vmem:[#allocation4 + $0x8] sm:$0xff]  ;;  %v61_v5 = vld [vmem:[%s4541_s2] sm:$0xff]  ;;  %v62_v6 = vld [vmem:[%s4541_s2 + $0x8] sm:$0xff]  ;;  %vm99_vm1 = vcmask 195584   ;;  %s3913_s1 = smov 32   ;;  %s3914_s28 = smov 64  }
  0x28   :  { %3503 = vmatprep.subr.bf16.mxu0 %v3910_v0  ;;  %3144 = vmatprep.mubr.msk.f32.mxu0 %vm3911_vm0, %v3912_v1  ;;  %v3504_v4 = vpack.c.bf16 %v97_v3, %v96_v2  ;;  %v98_v7 = vld [vmem:[#allocation4 + $0x10] sm:$0xff]  ;;  %v92_v8 = vld [vmem:[%s4539_s0 + $0x28] sm:$0xff]  ;;  %v4013_v9 = vpack.c.bf16 %v62_v6, %v61_v5  ;;  %v63_v10 = vld [vmem:[%s4541_s2 + $0x10] sm:$0xff]  ;;  %vm247_vm2 = vcmask 261120  }
  0x29   :  { %v64_v11 = vld [vmem:[%s4541_s2 + $0x18] sm:$0xff]  ;;  %v87_v12 = vld [vmem:[%s4539_s0] sm:$0xff]  ;;  %v93_v13 = vld [vmem:[%s4539_s0 + $0x30] sm:$0xff] }
  0x2a   :  { %3676 = vmatpush3.bf16.msra.mxu1 %v3504_v4  ;;  %3505 = vmatpush3.bf16.msra.mxu0 %v3504_v4  ;;  %v4032_v14 = vpack.c.bf16 %v64_v11, %v63_v10  ;;  %v94_v15 = vld [vmem:[%s4539_s0 + $0x38] sm:$0xff]  ;;  %v95_v16 = vld [vmem:[%s4539_s0 + $0x40] sm:$0xff]  ;;  %v70_v43 = vld [vmem:[%s4544_s5 + $0x8] sm:$0xff] }
  0x2b   :  { %3675 = vmatprep.subr.mxu1 %v3912_v1  ;;  %3142 = vmatprep.subr.mxu0 %v3912_v1  ;;  %v4070_v27 = vld [vmem:[%s4542_s3] ss:$0 sm:$0xff]  ;;  %v71_v44 = vld [vmem:[%s4544_s5 + $0x10] sm:$0xff]  ;;  %v72_v46 = vld [vmem:[%s4544_s5 + $0x18] sm:$0xff] }
  0x2c   :  { %v69_v42 = vld [vmem:[%s4544_s5] sm:$0xff]  ;;  %v66_v48 = vld [vmem:[%s4543_s4 + $0x8] sm:$0xff]  ;;  %v4101_v50 = vpack.c.bf16 %v72_v46, %v71_v44  ;;  %v67_v51 = vld [vmem:[%s4543_s4 + $0x10] sm:$0xff] }
  0x2d   :  { %v4087_v45 = vpack.c.bf16 %v70_v43, %v69_v42  ;;  %v65_v47 = vld [vmem:[%s4543_s4] sm:$0xff]  ;;  %v68_v52 = vld [vmem:[%s4543_s4 + $0x18] sm:$0xff]  ;;  %v88_v55 = vld [vmem:[%s4539_s0 + $0x8] sm:$0xff] }
  0x2e   :  { %3677 = vmatpush3.msra.mxu1 %v98_v7  ;;  %3143 = vmatpush3.msra.mxu0 %v98_v7  ;;  %v4098_v49 = vpack.c.bf16 %v66_v48, %v65_v47  ;;  %v4112_v53 = vpack.c.bf16 %v68_v52, %v67_v51  ;;  %v4150_v63 = vld [vmem:[%s4545_s6] ss:$0 sm:$0xff] }
  0x2f   :  { %3160 = vmatmul.mubr.msk.f32.vlgmr.msra.gmra.mrb[0].mxu1 %vm99_vm1, %v92_v8  ;;  %3506 = vmatprep.subr.bf16.mxu1 %v3910_v0 }
  0x30   :  { %3508 = vmatpush3.bf16.msra.mxu1 %v4013_v9  ;;  %3162 = vmatprep.mubr.msk.f32.mxu1 %vm3911_vm0, %v3912_v1 }
  0x31   :  { %3509 = vmatprep.subr.bf16.mxu1 %v3910_v0  ;;  %3145 = vmatmul.mubr.msk.f32.vlgmr.msra.gmra.mrb[0].mxu0 %vm99_vm1, %v87_v12 }
  0x32   :  { %3147 = vmatprep.mubr.msk.f32.mxu0 %vm3911_vm0, %v3912_v1  ;;  %3536 = vmatprep.subr.bf16.mxu0 %v3910_v0 }
  0x33   :  { %3163 = vmatmul.mubr.msk.f32.gmra.mrb[2].mxu1 %vm99_vm1, %v93_v13  ;;  %3538 = vmatpush3.bf16.msra.mxu0 %v4098_v49 }
  0x34   :  { %3165 = vmatprep.mubr.msk.f32.mxu1 %vm3911_vm0, %v3912_v1  ;;  %3511 = vmatpush3.bf16.msra.mxu1 %v4032_v14 }
  0x35   :  { %3512 = vmatprep.subr.bf16.mxu1 %v3910_v0  ;;  %3539 = vmatprep.subr.bf16.mxu0 %v3910_v0 }
  0x36   :  { %3148 = vmatmul.mubr.msk.f32.gmra.mrb[2].mxu0 %vm99_vm1, %v88_v55 }
  0x37   :  { %3166 = vmatmul.mubr.msk.f32.gmra.mrb[4].mxu1 %vm99_vm1, %v94_v15  ;;  %3541 = vmatpush3.bf16.msra.mxu0 %v4112_v53 }
  0x38   :  { %3168 = vmatprep.mubr.msk.f32.mxu1 %vm3911_vm0, %v3912_v1  ;;  %3548 = vmatprep.subr.bf16.mxu0 %v3910_v0 }
  0x39   :  { %3150 = vmatprep.mubr.msk.f32.mxu0 %vm3911_vm0, %v3912_v1 }
  0x3b   :  { %3169 = vmatmul.mubr.msk.f32.gmra.mrb[6].mxu1 %vm99_vm1, %v95_v16 }
  0x3c   :  { %3179 = vmatprep.mubr.msk.f32.mxu1 %vm3911_vm0, %v3912_v1 }
  0x3f   :  { %3180 = vmatmul.mubr.f32.vlgmr.msra.gmra.mrb[8].mxu1 %v3912_v1 }
  0x40   :  { %3190 = vmatprep.mubr.msk.f32.mxu1 %vm3911_vm0, %v3912_v1  ;;  %3514 = vmatpush3.bf16.msra.mxu1 %v4087_v45 }
  0x41   :  { %3515 = vmatprep.subr.bf16.mxu1 %v3910_v0 }
  0x44   :  { %3517 = vmatpush3.bf16.msra.mxu1 %v4101_v50 }
  0x45   :  { %3518 = vmatprep.subr.bf16.mxu1 %v3910_v0 }
  0x47   :  { %3191 = vmatmul.mubr.f32.vlgmr.msra.gmra.mrb[10].mxu1 %v3912_v1 }
  0x48   :  { %3520 = vmatpush3.bf16.msra.mxu1 %v4098_v49  ;;  %3201 = vmatprep.mubr.msk.f32.mxu1 %vm3911_vm0, %v3912_v1 }
  0x49   :  { %3521 = vmatprep.subr.bf16.mxu1 %v3910_v0 }
  0x4c   :  { %3523 = vmatpush3.bf16.msra.mxu1 %v4112_v53 }
  0x4d   :  { %3524 = vmatprep.subr.bf16.mxu1 %v3910_v0 }
 0x102   :  { %v4059_v17 = vpop.f32.mrb[0].mxu1 }
 0x103   :  { %v3161_v18 = vpop.f32.mrb[1].mxu1 }
 0x104   :  { %v193_v19 = vpop.f32.mrb[0].mxu0 }
 0x105   :  { %v3146_v20 = vpop.f32.mrb[1].mxu0 }
 0x106   :  { %v4061_v21 = vpop.f32.mrb[2].mxu1 }
 0x107   :  { %v3164_v22 = vpop.f32.mrb[3].mxu1 }
 0x109   :  { %v198_v61 = vpop.f32.mrb[2].mxu0 }
 0x10a   :  { %v4063_v23 = vpop.f32.mrb[4].mxu1  ;;  %v3149_v62 = vpop.f32.mrb[3].mxu0 }
 0x10b   :  { %v3167_v24 = vpop.f32.mrb[5].mxu1 }
 0x10e   :  { %v4065_v25 = vpop.f32.mrb[6].mxu1 }
 0x10f   :  { %v3170_v26 = vpop.f32.mrb[7].mxu1 }
 0x112   :  { %v317_v28 = vpop.f32.mrb[8].mxu1 }
 0x113   :  { %v321_v29 = vadd.f32 %v317_v28, %v193_v19  ;;  %v3181_v30 = vpop.f32.mrb[9].mxu1 }
 0x115   :  { %v322_v31 = vadd.f32 %v4070_v27, %v321_v29 }
 0x117   :  { %3688 = vtanh.f32 %v322_v31  ;;  %v2925_v33 = vmul.f32 -1.442695, %v322_v31 }
 0x119   :  { %3690 = vpow2.f32 %v2925_v33 }
 0x11a   :  { %v413_v58 = vpop.f32.mrb[10].mxu1 }
 0x11b   :  { %v3192_v59 = vpop.f32.mrb[11].mxu1 }
 0x121   :  { %v3689_v32 = vpop.eup %3688 }
 0x122   :  { %332 = vrot.lane.b32.xlu0 %v3689_v32, %s3913_s1 }
 0x123   :  { %v3691_v34 = vpop.eup %3690 }
 0x124   :  { %v326_v35 = vadd.f32 1.0, %v3691_v34 }
 0x126   :  { %3692 = vrcp.f32 %v326_v35 }
 0x130   :  { %v3693_v36 = vpop.eup %3692 }
 0x131   :  { %v330_v39 = vmul.f32 0.0, %v3693_v36 }
 0x194   :  { %v333_v37 = vpop.permute.xlu0 %332 }
 0x195   :  { %v335_v38 = vmul.f32 %v3693_v36, %v333_v37  ;;  %v89_v37 = vld [vmem:[%s4539_s0 + $0x10] sm:$0xff] }
 0x196   :  { %3151 = vmatmul.mubr.msk.f32.gmra.mrb[4].mxu0 %vm99_vm1, %v89_v37 }
 0x197   :  { %337 = vrot.lane.b32.xlu0 %v335_v38, %s3913_s1  ;;  %3153 = vmatprep.mubr.msk.f32.mxu0 %vm3911_vm0, %v3912_v1 }
 0x209   :  { %v338_v40 = vpop.permute.xlu0 %337 }
 0x20a   :  { %v4075_v41 = vadd.f32 %v338_v40, %v330_v39  ;;  %v90_v39 = vld [vmem:[%s4539_s0 + $0x18] sm:$0xff] }
 0x20b   :  { %3154 = vmatmul.mubr.msk.f32.gmra.mrb[6].mxu0 %vm99_vm1, %v90_v39 }
 0x20c   :  { %3694 = vtanh.f32 %v4075_v41  ;;  %3156 = vmatprep.mubr.msk.f32.mxu0 %vm3911_vm0, %v3912_v1 }
 0x216   :  { %v3695_v54 = vpop.eup %3694 }
 0x217   :  { %343 = vrot.lane.b32.xlu1 %v3695_v54, %s3913_s1 }
 0x269   :  { %v203_v47 = vpop.f32.mrb[4].mxu0 }
 0x26a   :  { %v3152_v48 = vpop.f32.mrb[5].mxu0 }
 0x289   :  { %v344_v56 = vpop.permute.xlu1 %343 }
 0x28a   :  { %v346_v57 = vmul.f32 %v3693_v36, %v344_v56 }
 0x28c   :  { %418 = vrot.lane.b32.xlu1 %v346_v57, %s3914_s28 }
 0x2de   :  { %v4187_v51 = vpop.f32.mrb[6].mxu0 }
 0x2df   :  { %v3155_v52 = vpop.f32.mrb[7].mxu0 }
 0x2fe   :  { %v419_v60 = vpop.permute.xlu1 %418 }
 0x2ff   :  { %3202 = vmatmul.mubr.msk.f32.vlgmr.msra.gmra.mrb[12].mxu1 %vm247_vm2, %v419_v60 }
 0x300   :  { %3526 = vmatpush3.bf16.msra.mxu1 %v4013_v9  ;;  %3212 = vmatprep.mubr.msk.f32.mxu1 %vm3911_vm0, %v3912_v1 }
 0x301   :  { %3527 = vmatprep.subr.bf16.mxu1 %v3910_v0 }
 0x304   :  { %3529 = vmatpush3.bf16.msra.mxu1 %v4032_v14 }
 0x305   :  { %3530 = vmatprep.subr.bf16.mxu1 %v3910_v0 }
 0x307   :  { %3213 = vmatmul.mubr.msk.f32.vlgmr.msra.gmra.mrb[14].mxu1 %vm247_vm2, %v419_v60 }
 0x308   :  { %3532 = vmatpush3.bf16.msra.mxu1 %v4087_v45  ;;  %3223 = vmatprep.mubr.msk.f32.mxu1 %vm3911_vm0, %v3912_v1 }
 0x309   :  { %3533 = vmatprep.subr.bf16.mxu1 %v3910_v0 }
 0x30c   :  { %3535 = vmatpush3.bf16.msra.mxu1 %v4101_v50 }
 0x30d   :  { %3542 = vmatprep.subr.bf16.mxu1 %v3910_v0 }
 0x3d2   :  { %v488_v2 = vpop.f32.mrb[12].mxu1 }
 0x3d3   :  { %v489_v3 = vadd.f32 %v488_v2, %v413_v58  ;;  %v3203_v4 = vpop.f32.mrb[13].mxu1 }
 0x3d5   :  { %v492_v5 = vadd.f32 %v4150_v63, %v489_v3 }
 0x3d7   :  { %3696 = vtanh.f32 %v492_v5  ;;  %v2927_v13 = vmul.f32 -1.442695, %v492_v5 }
 0x3da   :  { %v590_v6 = vpop.f32.mrb[14].mxu1 }
 0x3db   :  { %v594_v7 = vadd.f32 %v590_v6, %v198_v61  ;;  %v3214_v8 = vpop.f32.mrb[15].mxu1 }
 0x3dd   :  { %v595_v10 = vadd.f32 %v4070_v27, %v594_v7 }
 0x3df   :  { %3698 = vtanh.f32 %v595_v10  ;;  %v2929_v15 = vmul.f32 -1.442695, %v595_v10 }
 0x3e0   :  { %3700 = vpow2.f32 %v2927_v13 }
 0x3e1   :  { %v3697_v11 = vpop.eup %3696  ;;  %3702 = vpow2.f32 %v2929_v15 }
 0x3e2   :  { %502 = vrot.lane.b32.xlu0 %v3697_v11, %s3913_s1 }
 0x3e9   :  { %v3699_v12 = vpop.eup %3698 }
 0x3ea   :  { %605 = vrot.lane.b32.xlu1 %v3699_v12, %s3913_s1  ;;  %v3701_v16 = vpop.eup %3700 }
 0x3eb   :  { %v496_v18 = vadd.f32 1.0, %v3701_v16  ;;  %v3703_v19 = vpop.eup %3702 }
 0x3ec   :  { %v599_v20 = vadd.f32 1.0, %v3703_v19 }
 0x3ed   :  { %3704 = vrcp.f32 %v496_v18 }
 0x3ee   :  { %3706 = vrcp.f32 %v599_v20 }
 0x3f7   :  { %v3705_v22 = vpop.eup %3704 }
 0x3f8   :  { %v3707_v28 = vpop.eup %3706  ;;  %v500_v31 = vmul.f32 0.0, %v3705_v22 }
 0x3f9   :  { %v603_v34 = vmul.f32 %v3707_v28, %v4075_v41  ;;  %v91_v41 = vld [vmem:[%s4539_s0 + $0x20] sm:$0xff] }
 0x3fa   :  { %3157 = vmatmul.mubr.msk.f32.gmra.mrb[8].mxu0 %vm99_vm1, %v91_v41 }
 0x3fb   :  { %3234 = vmatprep.mubr.msk.f32.mxu0 %vm3911_vm0, %v3912_v1 }
 0x454   :  { %v503_v24 = vpop.permute.xlu0 %502 }
 0x455   :  { %v505_v26 = vmul.f32 %v3705_v22, %v503_v24 }
 0x457   :  { %507 = vrot.lane.b32.xlu0 %v505_v26, %s3913_s1 }
 0x45c   :  { %v606_v29 = vpop.permute.xlu1 %605 }
 0x45d   :  { %v608_v30 = vmul.f32 %v3707_v28, %v606_v29 }
 0x45f   :  { %610 = vrot.lane.b32.xlu1 %v608_v30, %s3913_s1 }
 0x4c9   :  { %v508_v32 = vpop.permute.xlu0 %507 }
 0x4ca   :  { %v4158_v33 = vadd.f32 %v508_v32, %v500_v31 }
 0x4cc   :  { %3708 = vtanh.f32 %v4158_v33 }
 0x4cd   :  { %v4211_v56 = vpop.f32.mrb[8].mxu0 }
 0x4ce   :  { %v3158_v57 = vpop.f32.mrb[9].mxu0 }
 0x4d1   :  { %v611_v35 = vpop.permute.xlu1 %610 }
 0x4d2   :  { %v4162_v36 = vadd.f32 %v611_v35, %v603_v34 }
 0x4d4   :  { %3710 = vtanh.f32 %v4162_v36 }
 0x4d6   :  { %v3709_v38 = vpop.eup %3708 }
 0x4d7   :  { %513 = vrot.lane.b32.xlu0 %v3709_v38, %s3913_s1 }
 0x4de   :  { %v3711_v40 = vpop.eup %3710 }
 0x4df   :  { %616 = vrot.lane.b32.xlu1 %v3711_v40, %s3913_s1 }
 0x549   :  { %v514_v42 = vpop.permute.xlu0 %513 }
 0x54a   :  { %v516_v43 = vmul.f32 %v3705_v22, %v514_v42 }
 0x54c   :  { %518 = vrot.lane.b32.xlu0 %v516_v43, %s3914_s28 }
 0x551   :  { %v617_v44 = vpop.permute.xlu1 %616 }
 0x552   :  { %v619_v46 = vmul.f32 %v3707_v28, %v617_v44 }
 0x554   :  { %693 = vrot.lane.b32.xlu1 %v619_v46, %s3914_s28 }
 0x5be   :  { %v519_v54 = vpop.permute.xlu0 %518 }
 0x5bf   :  { %521 = vst.msk [vmem:[#allocation3] sm:$0xff] %vm247_vm2, %v519_v54  ;;  %3224 = vmatmul.mubr.msk.f32.vlgmr.msra.gmra.mrb[16].mxu1 %vm247_vm2, %v519_v54 }
 0x5c0   :  { %3544 = vmatpush3.bf16.msra.mxu1 %v4013_v9  ;;  %3245 = vmatprep.mubr.msk.f32.mxu1 %vm3911_vm0, %v3912_v1 }
 0x5c1   :  { %3545 = vmatprep.subr.bf16.mxu1 %v3910_v0 }
 0x5c4   :  { %3547 = vmatpush3.bf16.msra.mxu1 %v4032_v14 }
 0x5c5   :  { %3554 = vmatprep.subr.bf16.mxu1 %v3910_v0 }
 0x5c6   :  { %v694_v55 = vpop.permute.xlu1 %693 }
 0x5c7   :  { %3235 = vmatmul.mubr.msk.f32.vlgmr.msra.gmra.mrb[10].mxu0 %vm247_vm2, %v694_v55  ;;  %3246 = vmatmul.mubr.msk.f32.vlgmr.msra.gmra.mrb[18].mxu1 %vm247_vm2, %v694_v55 }
 0x5c8   :  { %3550 = vmatpush3.bf16.msra.mxu0 %v4087_v45  ;;  %3556 = vmatpush3.bf16.msra.mxu1 %v4098_v49 }
 0x5c9   :  { %3551 = vmatprep.subr.bf16.mxu0 %v3910_v0  ;;  %3557 = vmatprep.subr.bf16.mxu1 %v3910_v0 }
 0x5ca   :  { %3256 = vmatprep.mubr.msk.f32.mxu0 %vm3911_vm0, %v3912_v1  ;;  %3267 = vmatprep.mubr.msk.f32.mxu1 %vm3911_vm0, %v3912_v1 }
 0x5cc   :  { %3553 = vmatpush3.bf16.msra.mxu0 %v4101_v50  ;;  %3559 = vmatpush3.bf16.msra.mxu1 %v4112_v53 }
 0x5cd   :  { %3560 = vmatprep.subr.bf16.mxu0 %v3910_v0  ;;  %3566 = vmatprep.subr.bf16.mxu1 %v3910_v0 }
 0x692   :  { %v688_v58 = vpop.f32.mrb[16].mxu1 }
 0x693   :  { %v3225_v59 = vpop.f32.mrb[17].mxu1 }
 0x69a   :  { %v763_v60 = vpop.f32.mrb[10].mxu0  ;;  %v866_v61 = vpop.f32.mrb[18].mxu1 }
 0x69b   :  { %v764_v62 = vadd.f32 %v763_v60, %v688_v58  ;;  %v870_v2 = vadd.f32 %v866_v61, %v203_v47  ;;  %v3236_v3 = vpop.f32.mrb[11].mxu0  ;;  %v3247_v4 = vpop.f32.mrb[19].mxu1 }
 0x69d   :  { %v767_v5 = vadd.f32 %v4150_v63, %v764_v62  ;;  %v871_v6 = vadd.f32 %v4070_v27, %v870_v2 }
 0x69f   :  { %3712 = vtanh.f32 %v767_v5  ;;  %v2932_v10 = vmul.f32 -1.442695, %v767_v5  ;;  %v2934_v11 = vmul.f32 -1.442695, %v871_v6 }
 0x6a0   :  { %3714 = vtanh.f32 %v871_v6 }
 0x6a1   :  { %3716 = vpow2.f32 %v2932_v10 }
 0x6a2   :  { %3718 = vpow2.f32 %v2934_v11 }
 0x6a9   :  { %v3713_v7 = vpop.eup %3712 }
 0x6aa   :  { %v3715_v8 = vpop.eup %3714  ;;  %777 = vrot.lane.b32.xlu0 %v3713_v7, %s3913_s1 }
 0x6ab   :  { %881 = vrot.lane.b32.xlu1 %v3715_v8, %s3913_s1  ;;  %v3717_v12 = vpop.eup %3716 }
 0x6ac   :  { %v3719_v13 = vpop.eup %3718  ;;  %v771_v15 = vadd.f32 1.0, %v3717_v12 }
 0x6ad   :  { %v875_v16 = vadd.f32 1.0, %v3719_v13 }
 0x6ae   :  { %3720 = vrcp.f32 %v771_v15 }
 0x6af   :  { %3722 = vrcp.f32 %v875_v16 }
 0x6b8   :  { %v3721_v18 = vpop.eup %3720 }
 0x6b9   :  { %v3723_v20 = vpop.eup %3722  ;;  %v775_v28 = vmul.f32 %v3721_v18, %v4158_v33 }
 0x6ba   :  { %v879_v30 = vmul.f32 %v3723_v20, %v4162_v36 }
 0x71c   :  { %v778_v19 = vpop.permute.xlu0 %777 }
 0x71d   :  { %v780_v22 = vmul.f32 %v3721_v18, %v778_v19  ;;  %v882_v24 = vpop.permute.xlu1 %881 }
 0x71e   :  { %v884_v26 = vmul.f32 %v3723_v20, %v882_v24 }
 0x71f   :  { %782 = vrot.lane.b32.xlu0 %v780_v22, %s3913_s1 }
 0x720   :  { %886 = vrot.lane.b32.xlu1 %v884_v26, %s3913_s1 }
 0x791   :  { %v783_v29 = vpop.permute.xlu0 %782 }
 0x792   :  { %v4221_v31 = vadd.f32 %v783_v29, %v775_v28  ;;  %v887_v32 = vpop.permute.xlu1 %886 }
 0x793   :  { %v4223_v34 = vadd.f32 %v887_v32, %v879_v30 }
 0x794   :  { %3724 = vtanh.f32 %v4221_v31 }
 0x795   :  { %3726 = vtanh.f32 %v4223_v34 }
 0x79e   :  { %v3725_v35 = vpop.eup %3724 }
 0x79f   :  { %v3727_v37 = vpop.eup %3726  ;;  %788 = vrot.lane.b32.xlu0 %v3725_v35, %s3913_s1 }
 0x7a0   :  { %892 = vrot.lane.b32.xlu1 %v3727_v37, %s3913_s1 }
 0x811   :  { %v789_v38 = vpop.permute.xlu0 %788 }
 0x812   :  { %v791_v33 = vmul.f32 %v3721_v18, %v789_v38  ;;  %v893_v39 = vpop.permute.xlu1 %892 }
 0x813   :  { %v895_v40 = vmul.f32 %v3723_v20, %v893_v39 }
 0x814   :  { %793 = vrot.lane.b32.xlu0 %v791_v33, %s3914_s28 }
 0x815   :  { %969 = vrot.lane.b32.xlu1 %v895_v40, %s3914_s28 }
 0x886   :  { %v794_v36 = vpop.permute.xlu0 %793 }
 0x887   :  { %797 = vst.msk [vmem:[#allocation3 + $0x8] sm:$0xff] %vm247_vm2, %v794_v36  ;;  %v970_v41 = vpop.permute.xlu1 %969  ;;  %3257 = vmatmul.mubr.msk.f32.vlgmr.msra.gmra.mrb[12].mxu0 %vm247_vm2, %v794_v36 }
 0x888   :  { %3268 = vmatmul.mubr.msk.f32.vlgmr.msra.gmra.mrb[20].mxu1 %vm247_vm2, %v970_v41  ;;  %3562 = vmatpush3.bf16.msra.mxu0 %v4013_v9 }
 0x889   :  { %3563 = vmatprep.subr.bf16.mxu0 %v3910_v0  ;;  %3278 = vmatprep.mubr.msk.f32.mxu0 %vm3911_vm0, %v3912_v1 }
 0x88a   :  { %3568 = vmatpush3.bf16.msra.mxu1 %v4087_v45  ;;  %3289 = vmatprep.mubr.msk.f32.mxu1 %vm3911_vm0, %v3912_v1 }
 0x88b   :  { %3569 = vmatprep.subr.bf16.mxu1 %v3910_v0 }
 0x88c   :  { %3565 = vmatpush3.bf16.msra.mxu0 %v4032_v14 }
 0x88d   :  { %3572 = vmatprep.subr.bf16.mxu0 %v3910_v0 }
 0x88e   :  { %3571 = vmatpush3.bf16.msra.mxu1 %v4101_v50 }
 0x88f   :  { %3279 = vmatmul.mubr.msk.f32.vlgmr.msra.gmra.mrb[14].mxu0 %vm247_vm2, %v970_v41  ;;  %3578 = vmatprep.subr.bf16.mxu1 %v3910_v0 }
 0x890   :  { %3574 = vmatpush3.bf16.msra.mxu0 %v4098_v49  ;;  %3300 = vmatprep.mubr.msk.f32.mxu0 %vm3911_vm0, %v3912_v1 }
 0x891   :  { %3575 = vmatprep.subr.bf16.mxu0 %v3910_v0 }
 0x894   :  { %3577 = vmatpush3.bf16.msra.mxu0 %v4112_v53 }
 0x895   :  { %3584 = vmatprep.subr.bf16.mxu0 %v3910_v0 }
 0x95a   :  { %v964_v42 = vpop.f32.mrb[12].mxu0 }
 0x95b   :  { %v1039_v43 = vpop.f32.mrb[20].mxu1  ;;  %v3258_v44 = vpop.f32.mrb[13].mxu0 }
 0x95c   :  { %v1040_v46 = vadd.f32 %v1039_v43, %v964_v42  ;;  %v3269_v47 = vpop.f32.mrb[21].mxu1 }
 0x95e   :  { %v1043_v48 = vadd.f32 %v4150_v63, %v1040_v46 }
 0x960   :  { %3728 = vtanh.f32 %v1043_v48  ;;  %v2937_v60 = vmul.f32 -1.442695, %v1043_v48 }
 0x962   :  { %v1142_v52 = vpop.f32.mrb[14].mxu0 }
 0x963   :  { %v1146_v54 = vadd.f32 %v1142_v52, %v4187_v51  ;;  %v3280_v55 = vpop.f32.mrb[15].mxu0 }
 0x965   :  { %v1147_v57 = vadd.f32 %v4070_v27, %v1146_v54 }
 0x967   :  { %3730 = vtanh.f32 %v1147_v57  ;;  %v2939_v61 = vmul.f32 -1.442695, %v1147_v57 }
 0x968   :  { %3732 = vpow2.f32 %v2937_v60 }
 0x969   :  { %3734 = vpow2.f32 %v2939_v61 }
 0x96a   :  { %v3729_v58 = vpop.eup %3728 }
 0x96b   :  { %1053 = vrot.lane.b32.xlu0 %v3729_v58, %s3913_s1 }
 0x971   :  { %v3731_v59 = vpop.eup %3730 }
 0x972   :  { %1157 = vrot.lane.b32.xlu1 %v3731_v59, %s3913_s1  ;;  %v3733_v62 = vpop.eup %3732 }
 0x973   :  { %v1047_v2 = vadd.f32 1.0, %v3733_v62  ;;  %v3735_v3 = vpop.eup %3734 }
 0x974   :  { %v1151_v4 = vadd.f32 1.0, %v3735_v3 }
 0x975   :  { %3736 = vrcp.f32 %v1047_v2 }
 0x976   :  { %3738 = vrcp.f32 %v1151_v4 }
 0x97f   :  { %v3737_v51 = vpop.eup %3736 }
 0x980   :  { %v3739_v7 = vpop.eup %3738  ;;  %v1051_v11 = vmul.f32 %v3737_v51, %v4221_v31 }
 0x981   :  { %v1155_v15 = vmul.f32 %v3739_v7, %v4223_v34 }
 0x9dd   :  { %v1054_v5 = vpop.permute.xlu0 %1053 }
 0x9de   :  { %v1056_v6 = vmul.f32 %v3737_v51, %v1054_v5 }
 0x9e0   :  { %1058 = vrot.lane.b32.xlu0 %v1056_v6, %s3913_s1 }
 0x9e4   :  { %v1158_v8 = vpop.permute.xlu1 %1157 }
 0x9e5   :  { %v1160_v10 = vmul.f32 %v3739_v7, %v1158_v8 }
 0x9e7   :  { %1162 = vrot.lane.b32.xlu1 %v1160_v10, %s3913_s1 }
 0xa52   :  { %v1059_v12 = vpop.permute.xlu0 %1058 }
 0xa53   :  { %v4261_v13 = vadd.f32 %v1059_v12, %v1051_v11 }
 0xa55   :  { %3740 = vtanh.f32 %v4261_v13 }
 0xa59   :  { %v1163_v16 = vpop.permute.xlu1 %1162 }
 0xa5a   :  { %v4265_v18 = vadd.f32 %v1163_v16, %v1155_v15 }
 0xa5c   :  { %3742 = vtanh.f32 %v4265_v18 }
 0xa5f   :  { %v3741_v19 = vpop.eup %3740 }
 0xa60   :  { %1064 = vrot.lane.b32.xlu0 %v3741_v19, %s3913_s1 }
 0xa66   :  { %v3743_v20 = vpop.eup %3742 }
 0xa67   :  { %1168 = vrot.lane.b32.xlu1 %v3743_v20, %s3913_s1 }
 0xad2   :  { %v1065_v22 = vpop.permute.xlu0 %1064 }
 0xad3   :  { %v1067_v24 = vmul.f32 %v3737_v51, %v1065_v22 }
 0xad5   :  { %1069 = vrot.lane.b32.xlu0 %v1067_v24, %s3914_s28 }
 0xad9   :  { %v1169_v26 = vpop.permute.xlu1 %1168 }
 0xada   :  { %v1171_v28 = vmul.f32 %v3739_v7, %v1169_v26 }
 0xadc   :  { %1245 = vrot.lane.b32.xlu1 %v1171_v28, %s3914_s28 }
 0xb47   :  { %v1070_v29 = vpop.permute.xlu0 %1069 }
 0xb48   :  { %1073 = vst.msk [vmem:[#allocation3 + $0x10] sm:$0xff] %vm247_vm2, %v1070_v29  ;;  %3290 = vmatmul.mubr.msk.f32.vlgmr.msra.gmra.mrb[22].mxu1 %vm247_vm2, %v1070_v29 }
 0xb49   :  { %3580 = vmatpush3.bf16.msra.mxu1 %v4013_v9  ;;  %3311 = vmatprep.mubr.msk.f32.mxu1 %vm3911_vm0, %v3912_v1 }
 0xb4a   :  { %3581 = vmatprep.subr.bf16.mxu1 %v3910_v0 }
 0xb4d   :  { %3583 = vmatpush3.bf16.msra.mxu1 %v4032_v14 }
 0xb4e   :  { %v1246_v30 = vpop.permute.xlu1 %1245  ;;  %3590 = vmatprep.subr.bf16.mxu1 %v3910_v0 }
 0xb4f   :  { %3301 = vmatmul.mubr.msk.f32.vlgmr.msra.gmra.mrb[16].mxu0 %vm247_vm2, %v1246_v30 }
 0xb50   :  { %3312 = vmatmul.mubr.msk.f32.vlgmr.msra.gmra.mrb[24].mxu1 %vm247_vm2, %v1246_v30  ;;  %3586 = vmatpush3.bf16.msra.mxu0 %v4087_v45 }
 0xb51   :  { %3592 = vmatpush3.bf16.msra.mxu1 %v4098_v49  ;;  %3587 = vmatprep.subr.bf16.mxu0 %v3910_v0 }
 0xb52   :  { %3593 = vmatprep.subr.bf16.mxu1 %v3910_v0  ;;  %3322 = vmatprep.mubr.msk.f32.mxu0 %vm3911_vm0, %v3912_v1 }
 0xb53   :  { %3333 = vmatprep.mubr.msk.f32.mxu1 %vm3911_vm0, %v3912_v1 }
 0xb54   :  { %3589 = vmatpush3.bf16.msra.mxu0 %v4101_v50 }
 0xb55   :  { %3595 = vmatpush3.bf16.msra.mxu1 %v4112_v53  ;;  %3596 = vmatprep.subr.bf16.mxu0 %v3910_v0 }
 0xb56   :  { %3602 = vmatprep.subr.bf16.mxu1 %v3910_v0 }
 0xc1b   :  { %v1240_v31 = vpop.f32.mrb[22].mxu1 }
 0xc1c   :  { %v3291_v32 = vpop.f32.mrb[23].mxu1 }
 0xc22   :  { %v1315_v34 = vpop.f32.mrb[16].mxu0 }
 0xc23   :  { %v1316_v35 = vadd.f32 %v1315_v34, %v1240_v31  ;;  %v1418_v37 = vpop.f32.mrb[24].mxu1  ;;  %v3302_v38 = vpop.f32.mrb[17].mxu0 }
 0xc24   :  { %v1422_v33 = vadd.f32 %v1418_v37, %v4211_v56  ;;  %v3313_v39 = vpop.f32.mrb[25].mxu1 }
 0xc25   :  { %v1319_v40 = vadd.f32 %v4150_v63, %v1316_v35 }
 0xc26   :  { %v1423_v36 = vadd.f32 %v4070_v27, %v1422_v33 }
 0xc27   :  { %3744 = vtanh.f32 %v1319_v40  ;;  %v2942_v43 = vmul.f32 -1.442695, %v1319_v40 }
 0xc28   :  { %3746 = vtanh.f32 %v1423_v36  ;;  %v2944_v44 = vmul.f32 -1.442695, %v1423_v36 }
 0xc29   :  { %3748 = vpow2.f32 %v2942_v43 }
 0xc2a   :  { %3750 = vpow2.f32 %v2944_v44 }
 0xc31   :  { %v3745_v41 = vpop.eup %3744 }
 0xc32   :  { %v3747_v42 = vpop.eup %3746  ;;  %1329 = vrot.lane.b32.xlu0 %v3745_v41, %s3913_s1 }
 0xc33   :  { %1433 = vrot.lane.b32.xlu1 %v3747_v42, %s3913_s1  ;;  %v3749_v46 = vpop.eup %3748 }
 0xc34   :  { %v3751_v47 = vpop.eup %3750  ;;  %v1323_v56 = vadd.f32 1.0, %v3749_v46 }
 0xc35   :  { %v1427_v48 = vadd.f32 1.0, %v3751_v47 }
 0xc36   :  { %3752 = vrcp.f32 %v1323_v56 }
 0xc37   :  { %3754 = vrcp.f32 %v1427_v48 }
 0xc40   :  { %v3753_v52 = vpop.eup %3752 }
 0xc41   :  { %v3755_v55 = vpop.eup %3754  ;;  %v1327_v60 = vmul.f32 %v3753_v52, %v4261_v13 }
 0xc42   :  { %v1431_v62 = vmul.f32 %v3755_v55, %v4265_v18 }
 0xca4   :  { %v1330_v54 = vpop.permute.xlu0 %1329 }
 0xca5   :  { %v1332_v57 = vmul.f32 %v3753_v52, %v1330_v54  ;;  %v1434_v58 = vpop.permute.xlu1 %1433 }
 0xca6   :  { %v1436_v59 = vmul.f32 %v3755_v55, %v1434_v58 }
 0xca7   :  { %1334 = vrot.lane.b32.xlu0 %v1332_v57, %s3913_s1 }
 0xca8   :  { %1438 = vrot.lane.b32.xlu1 %v1436_v59, %s3913_s1 }
 0xd19   :  { %v1335_v61 = vpop.permute.xlu0 %1334 }
 0xd1a   :  { %v4303_v2 = vadd.f32 %v1335_v61, %v1327_v60  ;;  %v1439_v3 = vpop.permute.xlu1 %1438 }
 0xd1b   :  { %v4305_v4 = vadd.f32 %v1439_v3, %v1431_v62 }
 0xd1c   :  { %3756 = vtanh.f32 %v4303_v2 }
 0xd1d   :  { %3758 = vtanh.f32 %v4305_v4 }
 0xd26   :  { %v3757_v51 = vpop.eup %3756 }
 0xd27   :  { %v3759_v5 = vpop.eup %3758  ;;  %1340 = vrot.lane.b32.xlu0 %v3757_v51, %s3913_s1 }
 0xd28   :  { %1444 = vrot.lane.b32.xlu1 %v3759_v5, %s3913_s1 }
 0xd99   :  { %v1341_v6 = vpop.permute.xlu0 %1340 }
 0xd9a   :  { %v1343_v7 = vmul.f32 %v3753_v52, %v1341_v6  ;;  %v1445_v8 = vpop.permute.xlu1 %1444 }
 0xd9b   :  { %v1447_v10 = vmul.f32 %v3755_v55, %v1445_v8 }
 0xd9c   :  { %1345 = vrot.lane.b32.xlu0 %v1343_v7, %s3914_s28 }
 0xd9d   :  { %1521 = vrot.lane.b32.xlu1 %v1447_v10, %s3914_s28 }
 0xe0e   :  { %v1346_v11 = vpop.permute.xlu0 %1345 }
 0xe0f   :  { %1349 = vst.msk [vmem:[#allocation3 + $0x18] sm:$0xff] %vm247_vm2, %v1346_v11  ;;  %v1522_v12 = vpop.permute.xlu1 %1521  ;;  %3323 = vmatmul.mubr.msk.f32.vlgmr.msra.gmra.mrb[18].mxu0 %vm247_vm2, %v1346_v11 }
 0xe10   :  { %3334 = vmatmul.mubr.msk.f32.vlgmr.msra.gmra.mrb[26].mxu1 %vm247_vm2, %v1522_v12  ;;  %3598 = vmatpush3.bf16.msra.mxu0 %v4013_v9 }
 0xe11   :  { %3599 = vmatprep.subr.bf16.mxu0 %v3910_v0  ;;  %3344 = vmatprep.mubr.msk.f32.mxu0 %vm3911_vm0, %v3912_v1 }
 0xe12   :  { %3604 = vmatpush3.bf16.msra.mxu1 %v4087_v45  ;;  %3355 = vmatprep.mubr.msk.f32.mxu1 %vm3911_vm0, %v3912_v1 }
 0xe13   :  { %3605 = vmatprep.subr.bf16.mxu1 %v3910_v0 }
 0xe14   :  { %3601 = vmatpush3.bf16.msra.mxu0 %v4032_v14 }
 0xe15   :  { %3608 = vmatprep.subr.bf16.mxu0 %v3910_v0 }
 0xe16   :  { %3607 = vmatpush3.bf16.msra.mxu1 %v4101_v50 }
 0xe17   :  { %3345 = vmatmul.mubr.msk.f32.vlgmr.msra.gmra.mrb[20].mxu0 %vm247_vm2, %v1522_v12  ;;  %3614 = vmatprep.subr.bf16.mxu1 %v3910_v0 }
 0xe18   :  { %3610 = vmatpush3.bf16.msra.mxu0 %v4098_v49  ;;  %3366 = vmatprep.mubr.msk.f32.mxu0 %vm3911_vm0, %v3912_v1 }
 0xe19   :  { %3611 = vmatprep.subr.bf16.mxu0 %v3910_v0 }
 0xe1c   :  { %3613 = vmatpush3.bf16.msra.mxu0 %v4112_v53 }
 0xe1d   :  { %3620 = vmatprep.subr.bf16.mxu0 %v3910_v0 }
 0xee2   :  { %v1516_v13 = vpop.f32.mrb[18].mxu0 }
 0xee3   :  { %v1591_v15 = vpop.f32.mrb[26].mxu1  ;;  %v3324_v16 = vpop.f32.mrb[19].mxu0 }
 0xee4   :  { %v1592_v18 = vadd.f32 %v1591_v15, %v1516_v13  ;;  %v3335_v19 = vpop.f32.mrb[27].mxu1 }
 0xee6   :  { %v1595_v20 = vadd.f32 %v4150_v63, %v1592_v18 }
 0xee8   :  { %3760 = vtanh.f32 %v1595_v20  ;;  %v2947_v31 = vmul.f32 -1.442695, %v1595_v20 }
 0xeea   :  { %v1694_v22 = vpop.f32.mrb[20].mxu0 }
 0xeeb   :  { %v1698_v24 = vadd.f32 %v1694_v22, %v4059_v17  ;;  %v3346_v26 = vpop.f32.mrb[21].mxu0 }
 0xeed   :  { %v1699_v28 = vadd.f32 %v4070_v27, %v1698_v24 }
 0xeef   :  { %3762 = vtanh.f32 %v1699_v28  ;;  %v2949_v32 = vmul.f32 -1.442695, %v1699_v28 }
 0xef0   :  { %3764 = vpow2.f32 %v2947_v31 }
 0xef1   :  { %3766 = vpow2.f32 %v2949_v32 }
 0xef2   :  { %v3761_v29 = vpop.eup %3760 }
 0xef3   :  { %1605 = vrot.lane.b32.xlu0 %v3761_v29, %s3913_s1 }
 0xef9   :  { %v3763_v30 = vpop.eup %3762 }
 0xefa   :  { %1709 = vrot.lane.b32.xlu1 %v3763_v30, %s3913_s1  ;;  %v3765_v34 = vpop.eup %3764 }
 0xefb   :  { %v1599_v35 = vadd.f32 1.0, %v3765_v34  ;;  %v3767_v37 = vpop.eup %3766 }
 0xefc   :  { %v1703_v38 = vadd.f32 1.0, %v3767_v37 }
 0xefd   :  { %3768 = vrcp.f32 %v1599_v35 }
 0xefe   :  { %3770 = vrcp.f32 %v1703_v38 }
 0xf07   :  { %v3769_v17 = vpop.eup %3768 }
 0xf08   :  { %v3771_v40 = vpop.eup %3770  ;;  %v1603_v42 = vmul.f32 %v3769_v17, %v4303_v2 }
 0xf09   :  { %v1707_v46 = vmul.f32 %v3771_v40, %v4305_v4 }
 0xf65   :  { %v1606_v33 = vpop.permute.xlu0 %1605 }
 0xf66   :  { %v1608_v39 = vmul.f32 %v3769_v17, %v1606_v33 }
 0xf68   :  { %1610 = vrot.lane.b32.xlu0 %v1608_v39, %s3913_s1 }
 0xf6c   :  { %v1710_v36 = vpop.permute.xlu1 %1709 }
 0xf6d   :  { %v1712_v41 = vmul.f32 %v3771_v40, %v1710_v36 }
 0xf6f   :  { %1714 = vrot.lane.b32.xlu1 %v1712_v41, %s3913_s1 }
 0xfda   :  { %v1611_v43 = vpop.permute.xlu0 %1610 }
 0xfdb   :  { %v4343_v44 = vadd.f32 %v1611_v43, %v1603_v42 }
 0xfdd   :  { %3772 = vtanh.f32 %v4343_v44 }
 0xfe1   :  { %v1715_v47 = vpop.permute.xlu1 %1714 }
 0xfe2   :  { %v4347_v56 = vadd.f32 %v1715_v47, %v1707_v46 }
 0xfe4   :  { %3774 = vtanh.f32 %v4347_v56 }
 0xfe7   :  { %v3773_v48 = vpop.eup %3772 }
 0xfe8   :  { %1616 = vrot.lane.b32.xlu0 %v3773_v48, %s3913_s1 }
 0xfee   :  { %v3775_v52 = vpop.eup %3774 }
 0xfef   :  { %1720 = vrot.lane.b32.xlu1 %v3775_v52, %s3913_s1 }
0x105a   :  { %v1617_v54 = vpop.permute.xlu0 %1616 }
0x105b   :  { %v1619_v55 = vmul.f32 %v3769_v17, %v1617_v54  ;;  %v4422_v54 = vld [vmem:[%s4542_s3] ss:$0 sm:$0xff] }
0x105d   :  { %1621 = vrot.lane.b32.xlu0 %v1619_v55, %s3914_s28 }
0x1061   :  { %v1721_v57 = vpop.permute.xlu1 %1720 }
0x1062   :  { %v1723_v58 = vmul.f32 %v3771_v40, %v1721_v57 }
0x1064   :  { %1797 = vrot.lane.b32.xlu1 %v1723_v58, %s3914_s28 }
0x10cf   :  { %v1622_v59 = vpop.permute.xlu0 %1621 }
0x10d0   :  { %1625 = vst.msk [vmem:[#allocation3 + $0x20] sm:$0xff] %vm247_vm2, %v1622_v59  ;;  %3356 = vmatmul.mubr.msk.f32.vlgmr.msra.gmra.mrb[28].mxu1 %vm247_vm2, %v1622_v59 }
0x10d1   :  { %3616 = vmatpush3.bf16.msra.mxu1 %v4013_v9  ;;  %3377 = vmatprep.mubr.msk.f32.mxu1 %vm3911_vm0, %v3912_v1 }
0x10d2   :  { %3617 = vmatprep.subr.bf16.mxu1 %v3910_v0 }
0x10d5   :  { %3619 = vmatpush3.bf16.msra.mxu1 %v4032_v14 }
0x10d6   :  { %v1798_v60 = vpop.permute.xlu1 %1797  ;;  %3626 = vmatprep.subr.bf16.mxu1 %v3910_v0 }
0x10d7   :  { %3367 = vmatmul.mubr.msk.f32.vlgmr.msra.gmra.mrb[22].mxu0 %vm247_vm2, %v1798_v60 }
0x10d8   :  { %3378 = vmatmul.mubr.msk.f32.vlgmr.msra.gmra.mrb[30].mxu1 %vm247_vm2, %v1798_v60  ;;  %3622 = vmatpush3.bf16.msra.mxu0 %v4087_v45 }
0x10d9   :  { %3628 = vmatpush3.bf16.msra.mxu1 %v4098_v49  ;;  %3623 = vmatprep.subr.bf16.mxu0 %v3910_v0 }
0x10da   :  { %3629 = vmatprep.subr.bf16.mxu1 %v3910_v0  ;;  %3388 = vmatprep.mubr.msk.f32.mxu0 %vm3911_vm0, %v3912_v1 }
0x10db   :  { %3399 = vmatprep.mubr.msk.f32.mxu1 %vm3911_vm0, %v3912_v1 }
0x10dc   :  { %3625 = vmatpush3.bf16.msra.mxu0 %v4101_v50 }
0x10dd   :  { %3631 = vmatpush3.bf16.msra.mxu1 %v4112_v53  ;;  %3632 = vmatprep.subr.bf16.mxu0 %v3910_v0 }
0x10de   :  { %3638 = vmatprep.subr.bf16.mxu1 %v3910_v0 }
0x11a3   :  { %v1792_v61 = vpop.f32.mrb[28].mxu1 }
0x11a4   :  { %v3357_v62 = vpop.f32.mrb[29].mxu1 }
0x11aa   :  { %v1867_v2 = vpop.f32.mrb[22].mxu0 }
0x11ab   :  { %v1868_v3 = vadd.f32 %v1867_v2, %v1792_v61  ;;  %v1970_v4 = vpop.f32.mrb[30].mxu1  ;;  %v3368_v51 = vpop.f32.mrb[23].mxu0 }
0x11ac   :  { %v1974_v5 = vadd.f32 %v1970_v4, %v4061_v21  ;;  %v3379_v6 = vpop.f32.mrb[31].mxu1 }
0x11ad   :  { %v1871_v7 = vadd.f32 %v4150_v63, %v1868_v3 }
0x11ae   :  { %v1975_v8 = vadd.f32 %v4070_v27, %v1974_v5 }
0x11af   :  { %3776 = vtanh.f32 %v1871_v7  ;;  %v2952_v12 = vmul.f32 -1.442695, %v1871_v7 }
0x11b0   :  { %3778 = vtanh.f32 %v1975_v8  ;;  %v2954_v13 = vmul.f32 -1.442695, %v1975_v8 }
0x11b1   :  { %3780 = vpow2.f32 %v2952_v12 }
0x11b2   :  { %3782 = vpow2.f32 %v2954_v13 }
0x11b9   :  { %v3777_v10 = vpop.eup %3776 }
0x11ba   :  { %v3779_v11 = vpop.eup %3778  ;;  %1881 = vrot.lane.b32.xlu0 %v3777_v10, %s3913_s1 }
0x11bb   :  { %1985 = vrot.lane.b32.xlu1 %v3779_v11, %s3913_s1  ;;  %v3781_v15 = vpop.eup %3780 }
0x11bc   :  { %v3783_v16 = vpop.eup %3782  ;;  %v1875_v21 = vadd.f32 1.0, %v3781_v15 }
0x11bd   :  { %v1979_v18 = vadd.f32 1.0, %v3783_v16 }
0x11be   :  { %3784 = vrcp.f32 %v1875_v21 }
0x11bf   :  { %3786 = vrcp.f32 %v1979_v18 }
0x11c8   :  { %v3785_v19 = vpop.eup %3784 }
0x11c9   :  { %v3787_v20 = vpop.eup %3786  ;;  %v1879_v28 = vmul.f32 %v3785_v19, %v4343_v44 }
0x11ca   :  { %v1983_v30 = vmul.f32 %v3787_v20, %v4347_v56 }
0x122c   :  { %v1882_v27 = vpop.permute.xlu0 %1881 }
0x122d   :  { %v1884_v22 = vmul.f32 %v3785_v19, %v1882_v27  ;;  %v1986_v24 = vpop.permute.xlu1 %1985 }
0x122e   :  { %v1988_v26 = vmul.f32 %v3787_v20, %v1986_v24 }
0x122f   :  { %1886 = vrot.lane.b32.xlu0 %v1884_v22, %s3913_s1 }
0x1230   :  { %1990 = vrot.lane.b32.xlu1 %v1988_v26, %s3913_s1 }
0x12a1   :  { %v1887_v29 = vpop.permute.xlu0 %1886 }
0x12a2   :  { %v4385_v31 = vadd.f32 %v1887_v29, %v1879_v28  ;;  %v1991_v32 = vpop.permute.xlu1 %1990 }
0x12a3   :  { %v4387_v34 = vadd.f32 %v1991_v32, %v1983_v30  ;;  %v4466_v30 = vld [vmem:[%s4545_s6] ss:$0 sm:$0xff] }
0x12a4   :  { %3788 = vtanh.f32 %v4385_v31 }
0x12a5   :  { %3790 = vtanh.f32 %v4387_v34 }
0x12ae   :  { %v3789_v35 = vpop.eup %3788 }
0x12af   :  { %v3791_v37 = vpop.eup %3790  ;;  %1892 = vrot.lane.b32.xlu0 %v3789_v35, %s3913_s1 }
0x12b0   :  { %1996 = vrot.lane.b32.xlu1 %v3791_v37, %s3913_s1 }
0x1321   :  { %v1893_v38 = vpop.permute.xlu0 %1892 }
0x1322   :  { %v1895_v17 = vmul.f32 %v3785_v19, %v1893_v38  ;;  %v1997_v33 = vpop.permute.xlu1 %1996 }
0x1323   :  { %v1999_v39 = vmul.f32 %v3787_v20, %v1997_v33 }
0x1324   :  { %1897 = vrot.lane.b32.xlu0 %v1895_v17, %s3914_s28 }
0x1325   :  { %2073 = vrot.lane.b32.xlu1 %v1999_v39, %s3914_s28 }
0x1396   :  { %v1898_v40 = vpop.permute.xlu0 %1897 }
0x1397   :  { %1901 = vst.msk [vmem:[#allocation3 + $0x28] sm:$0xff] %vm247_vm2, %v1898_v40  ;;  %v2074_v36 = vpop.permute.xlu1 %2073  ;;  %3389 = vmatmul.mubr.msk.f32.vlgmr.msra.gmra.mrb[24].mxu0 %vm247_vm2, %v1898_v40 }
0x1398   :  { %3400 = vmatmul.mubr.msk.f32.vlgmr.msra.gmra.mrb[32].mxu1 %vm247_vm2, %v2074_v36  ;;  %3634 = vmatpush3.bf16.msra.mxu0 %v4013_v9 }
0x1399   :  { %3635 = vmatprep.subr.bf16.mxu0 %v3910_v0  ;;  %3410 = vmatprep.mubr.msk.f32.mxu0 %vm3911_vm0, %v3912_v1 }
0x139a   :  { %3640 = vmatpush3.bf16.msra.mxu1 %v4087_v45  ;;  %3421 = vmatprep.mubr.msk.f32.mxu1 %vm3911_vm0, %v3912_v1 }
0x139b   :  { %3641 = vmatprep.subr.bf16.mxu1 %v3910_v0 }
0x139c   :  { %3637 = vmatpush3.bf16.msra.mxu0 %v4032_v14 }
0x139d   :  { %3644 = vmatprep.subr.bf16.mxu0 %v3910_v0 }
0x139e   :  { %3643 = vmatpush3.bf16.msra.mxu1 %v4101_v50 }
0x139f   :  { %3411 = vmatmul.mubr.msk.f32.vlgmr.msra.gmra.mrb[26].mxu0 %vm247_vm2, %v2074_v36  ;;  %3650 = vmatprep.subr.bf16.mxu1 %v3910_v0 }
0x13a0   :  { %3646 = vmatpush3.bf16.msra.mxu0 %v4098_v49  ;;  %3432 = vmatprep.mubr.msk.f32.mxu0 %vm3911_vm0, %v3912_v1 }
0x13a1   :  { %3647 = vmatprep.subr.bf16.mxu0 %v3910_v0 }
0x13a4   :  { %3649 = vmatpush3.bf16.msra.mxu0 %v4112_v53 }
0x13a5   :  { %3656 = vmatprep.subr.bf16.mxu0 %v3910_v0 }
0x146a   :  { %v2068_v41 = vpop.f32.mrb[24].mxu0 }
0x146b   :  { %v2143_v42 = vpop.f32.mrb[32].mxu1  ;;  %v3390_v43 = vpop.f32.mrb[25].mxu0 }
0x146c   :  { %v2144_v44 = vadd.f32 %v2143_v42, %v2068_v41  ;;  %v3401_v46 = vpop.f32.mrb[33].mxu1 }
0x146e   :  { %v2147_v47 = vadd.f32 %v4150_v63, %v2144_v44 }
0x1470   :  { %3792 = vtanh.f32 %v2147_v47  ;;  %v2957_v63 = vmul.f32 -1.442695, %v2147_v47 }
0x1472   :  { %v2246_v56 = vpop.f32.mrb[26].mxu0 }
0x1473   :  { %v2250_v48 = vadd.f32 %v2246_v56, %v4063_v23  ;;  %v3412_v52 = vpop.f32.mrb[27].mxu0 }
0x1475   :  { %v2251_v55 = vadd.f32 %v4422_v54, %v2250_v48 }
0x1477   :  { %3794 = vtanh.f32 %v2251_v55  ;;  %v2959_v59 = vmul.f32 -1.442695, %v2251_v55 }
0x1478   :  { %3796 = vpow2.f32 %v2957_v63 }
0x1479   :  { %3798 = vpow2.f32 %v2959_v59  ;;  %v2739_v59 = vld [vmem:[#allocation7] sm:$0xff] }
0x147a   :  { %v3793_v57 = vpop.eup %3792 }
0x147b   :  { %2157 = vrot.lane.b32.xlu0 %v3793_v57, %s3913_s1 }
0x1481   :  { %v3795_v58 = vpop.eup %3794 }
0x1482   :  { %2261 = vrot.lane.b32.xlu1 %v3795_v58, %s3913_s1  ;;  %v3797_v23 = vpop.eup %3796 }
0x1483   :  { %v2151_v60 = vadd.f32 1.0, %v3797_v23  ;;  %v3799_v61 = vpop.eup %3798  ;;  %v2740_v23 = vld [vmem:[#allocation7 + $0x8] sm:$0xff] }
0x1484   :  { %v2255_v62 = vadd.f32 1.0, %v3799_v61  ;;  %v2741_v61 = vld [vmem:[#allocation7 + $0x10] sm:$0xff] }
0x1485   :  { %3800 = vrcp.f32 %v2151_v60  ;;  %v3669_v60 = vpack.c.bf16 %v2740_v23, %v2739_v59 }
0x1486   :  { %3802 = vrcp.f32 %v2255_v62  ;;  %v2742_v62 = vld [vmem:[#allocation7 + $0x18] sm:$0xff] }
0x148f   :  { %v3801_v2 = vpop.eup %3800 }
0x1490   :  { %v3803_v51 = vpop.eup %3802  ;;  %v2155_v7 = vmul.f32 %v3801_v2, %v4385_v31 }
0x1491   :  { %v2259_v11 = vmul.f32 %v3803_v51, %v4387_v34 }
0x14ed   :  { %v2158_v3 = vpop.permute.xlu0 %2157 }
0x14ee   :  { %v2160_v4 = vmul.f32 %v3801_v2, %v2158_v3 }
0x14f0   :  { %2162 = vrot.lane.b32.xlu0 %v2160_v4, %s3913_s1  ;;  %v3672_v4 = vpack.c.bf16 %v2742_v62, %v2741_v61 }
0x14f4   :  { %v2262_v5 = vpop.permute.xlu1 %2261 }
0x14f5   :  { %v2264_v6 = vmul.f32 %v3803_v51, %v2262_v5  ;;  %v2731_v5 = vld [vmem:[#allocation3 + $0x8] sm:$0xff] }
0x14f7   :  { %2266 = vrot.lane.b32.xlu1 %v2264_v6, %s3913_s1  ;;  %v2732_v6 = vld [vmem:[#allocation3 + $0x10] sm:$0xff] }
0x1562   :  { %v2163_v8 = vpop.permute.xlu0 %2162 }
0x1563   :  { %v4430_v10 = vadd.f32 %v2163_v8, %v2155_v7  ;;  %v2734_v7 = vld [vmem:[#allocation3 + $0x20] sm:$0xff]  ;;  %v2735_v8 = vld [vmem:[#allocation3 + $0x28] sm:$0xff] }
0x1565   :  { %3804 = vtanh.f32 %v4430_v10 }
0x1569   :  { %v2267_v12 = vpop.permute.xlu1 %2266 }
0x156a   :  { %v4434_v13 = vadd.f32 %v2267_v12, %v2259_v11 }
0x156c   :  { %3806 = vtanh.f32 %v4434_v13 }
0x156f   :  { %v3805_v15 = vpop.eup %3804 }
0x1570   :  { %2168 = vrot.lane.b32.xlu0 %v3805_v15, %s3913_s1 }
0x1576   :  { %v3807_v16 = vpop.eup %3806 }
0x1577   :  { %2272 = vrot.lane.b32.xlu1 %v3807_v16, %s3913_s1 }
0x15e2   :  { %v2169_v21 = vpop.permute.xlu0 %2168 }
0x15e3   :  { %v2171_v18 = vmul.f32 %v3801_v2, %v2169_v21 }
0x15e5   :  { %2173 = vrot.lane.b32.xlu0 %v2171_v18, %s3914_s28 }
0x15e9   :  { %v2273_v19 = vpop.permute.xlu1 %2272 }
0x15ea   :  { %v2275_v27 = vmul.f32 %v3803_v51, %v2273_v19  ;;  %v2730_v51 = vld [vmem:[#allocation3] sm:$0xff]  ;;  %v2968_v19 = vld [vmem:[%s4547_s8] ss:$0 sm:$0xff]  ;;  %s3915_s8 = smov [#allocation9]  }
0x15eb   :  { %s2901_s18 = sshll.u32 %s3915_s8, 4  ;;  %s2902_s18 = int_to_ptr.vmem [resolvable:$true] %s2901_s18 }
0x15ec   :  { %2349 = vrot.lane.b32.xlu1 %v2275_v27, %s3914_s28  ;;  %s3878_s21 = scalar_lea.vmem %s2902_s18, 1152  ;;  %p3883_p3 = scmp.lt.s32.totalorder %s2902_s18, %s2902_s18 }
0x15ed   :  { %p3879_p2 = scmp.ne.s32.totalorder %s2902_s18, %s3878_s21  ;;  %p3884_p4 = scmp.lt.s32.totalorder %s3878_s21, %s3878_s21 }
0x15ef   :  { %p3885_p5 = por %p3884_p4, %p3883_p3 }
0x15f1   :  { %p3886_p6 = pnand %p3885_p5, %p3879_p2 }
0x1657   :  { %v2174_v20 = vpop.permute.xlu0 %2173 }
0x1658   :  { %2177 = vst.msk [vmem:[#allocation3 + $0x30] sm:$0xff] %vm247_vm2, %v2174_v20  ;;  %3422 = vmatmul.mubr.msk.f32.vlgmr.msra.gmra.mrb[34].mxu1 %vm247_vm2, %v2174_v20 }
0x1659   :  { %3652 = vmatpush3.bf16.msra.mxu1 %v4013_v9  ;;  %3443 = vmatprep.mubr.msk.f32.mxu1 %vm3911_vm0, %v3912_v1 }
0x165a   :  { %3653 = vmatprep.subr.bf16.mxu1 %v3910_v0 }
0x165d   :  { %3655 = vmatpush3.bf16.msra.mxu1 %v4032_v14 }
0x165e   :  { %v2350_v22 = vpop.permute.xlu1 %2349  ;;  %3662 = vmatprep.subr.bf16.mxu1 %v3910_v0 }
0x165f   :  { %3433 = vmatmul.mubr.msk.f32.vlgmr.msra.gmra.mrb[28].mxu0 %vm247_vm2, %v2350_v22 }
0x1660   :  { %3444 = vmatmul.mubr.msk.f32.vlgmr.msra.gmra.mrb[36].mxu1 %vm247_vm2, %v2350_v22  ;;  %3658 = vmatpush3.bf16.msra.mxu0 %v4087_v45 }
0x1661   :  { %3664 = vmatpush3.bf16.msra.mxu1 %v4098_v49  ;;  %3659 = vmatprep.subr.bf16.mxu0 %v3910_v0 }
0x1662   :  { %3665 = vmatprep.subr.bf16.mxu1 %v3910_v0  ;;  %3454 = vmatprep.mubr.msk.f32.mxu0 %vm3911_vm0, %v3912_v1 }
0x1663   :  { %3465 = vmatprep.mubr.msk.f32.mxu1 %vm3911_vm0, %v3912_v1 }
0x1664   :  { %3661 = vmatpush3.bf16.msra.mxu0 %v4101_v50 }
0x1665   :  { %3667 = vmatpush3.bf16.msra.mxu1 %v4112_v53  ;;  %3668 = vmatprep.subr.bf16.mxu0 %v3910_v0 }
0x172b   :  { %v2344_v9 = vpop.f32.mrb[34].mxu1 }
0x172c   :  { %v3423_v14 = vpop.f32.mrb[35].mxu1 }
0x1732   :  { %v2419_v45 = vpop.f32.mrb[28].mxu0 }
0x1733   :  { %v2420_v49 = vadd.f32 %v2419_v45, %v2344_v9  ;;  %v2522_v24 = vpop.f32.mrb[36].mxu1  ;;  %v3434_v26 = vpop.f32.mrb[29].mxu0 }
0x1734   :  { %v2526_v28 = vadd.f32 %v2522_v24, %v4065_v25  ;;  %v3445_v29 = vpop.f32.mrb[37].mxu1 }
0x1735   :  { %v2423_v50 = vadd.f32 %v4466_v30, %v2420_v49 }
0x1736   :  { %v2527_v53 = vadd.f32 %v4422_v54, %v2526_v28 }
0x1737   :  { %3808 = vtanh.f32 %v2423_v50  ;;  %v2962_v34 = vmul.f32 -1.442695, %v2423_v50 }
0x1738   :  { %3810 = vtanh.f32 %v2527_v53  ;;  %v2964_v25 = vmul.f32 -1.442695, %v2527_v53 }
0x1739   :  { %3812 = vpow2.f32 %v2962_v34 }
0x173a   :  { %3814 = vpow2.f32 %v2964_v25 }
0x1741   :  { %v3809_v31 = vpop.eup %3808 }
0x1742   :  { %v3811_v32 = vpop.eup %3810  ;;  %2433 = vrot.lane.b32.xlu0 %v3809_v31, %s3913_s1 }
0x1743   :  { %2537 = vrot.lane.b32.xlu1 %v3811_v32, %s3913_s1  ;;  %v3813_v35 = vpop.eup %3812 }
0x1744   :  { %v3815_v37 = vpop.eup %3814  ;;  %v2427_v38 = vadd.f32 1.0, %v3813_v35 }
0x1745   :  { %v2531_v17 = vadd.f32 1.0, %v3815_v37 }
0x1746   :  { %3816 = vrcp.f32 %v2427_v38 }
0x1747   :  { %3818 = vrcp.f32 %v2531_v17 }
0x1750   :  { %v3817_v33 = vpop.eup %3816 }
0x1751   :  { %v3819_v40 = vpop.eup %3818  ;;  %v2431_v43 = vmul.f32 %v3817_v33, %v4430_v10  ;;  %v2736_v10 = vld [vmem:[#allocation3 + $0x30] sm:$0xff] }
0x1752   :  { %v2535_v46 = vmul.f32 %v3819_v40, %v4434_v13 }
0x17b4   :  { %v2434_v39 = vpop.permute.xlu0 %2433 }
0x17b5   :  { %v2436_v36 = vmul.f32 %v3817_v33, %v2434_v39  ;;  %v2538_v41 = vpop.permute.xlu1 %2537 }
0x17b6   :  { %v2540_v42 = vmul.f32 %v3819_v40, %v2538_v41 }
0x17b7   :  { %2438 = vrot.lane.b32.xlu0 %v2436_v36, %s3913_s1 }
0x17b8   :  { %2542 = vrot.lane.b32.xlu1 %v2540_v42, %s3913_s1 }
0x1829   :  { %v2439_v44 = vpop.permute.xlu0 %2438 }
0x182a   :  { %v4476_v47 = vadd.f32 %v2439_v44, %v2431_v43  ;;  %v2543_v56 = vpop.permute.xlu1 %2542 }
0x182b   :  { %v2545_v48 = vadd.f32 %v2543_v56, %v2535_v46 }
0x182c   :  { %3820 = vtanh.f32 %v4476_v47 }
0x182d   :  { %3822 = vtanh.f32 %v2545_v48 }
0x1836   :  { %v3821_v52 = vpop.eup %3820 }
0x1837   :  { %v3823_v54 = vpop.eup %3822  ;;  %2444 = vrot.lane.b32.xlu0 %v3821_v52, %s3913_s1 }
0x1838   :  { %2548 = vrot.lane.b32.xlu1 %v3823_v54, %s3913_s1 }
0x18a9   :  { %v2445_v55 = vpop.permute.xlu0 %2444 }
0x18aa   :  { %v2447_v57 = vmul.f32 %v3817_v33, %v2445_v55  ;;  %v2549_v58 = vpop.permute.xlu1 %2548 }
0x18ab   :  { %v2551_v63 = vmul.f32 %v3819_v40, %v2549_v58 }
0x18ac   :  { %2449 = vrot.lane.b32.xlu0 %v2447_v57, %s3914_s28 }
0x18ad   :  { %2625 = vrot.lane.b32.xlu1 %v2551_v63, %s3914_s28 }
0x191e   :  { %v2450_v2 = vpop.permute.xlu0 %2449 }
0x191f   :  { %2453 = vst.msk [vmem:[#allocation3 + $0x38] sm:$0xff] %vm247_vm2, %v2450_v2  ;;  %v2626_v3 = vpop.permute.xlu1 %2625  ;;  %3455 = vmatmul.mubr.msk.f32.vlgmr.msra.gmra.mrb[30].mxu0 %vm247_vm2, %v2450_v2 }
0x1920   :  { %3466 = vmatmul.mubr.msk.f32.vlgmr.msra.gmra.mrb[38].mxu1 %vm247_vm2, %v2626_v3  ;;  %3670 = vmatpush3.bf16.msra.mxu0 %v3669_v60 }
0x1921   :  { %3671 = vmatprep.subr.bf16.mxu0 %v3910_v0  ;;  %3476 = vmatprep.mubr.msk.f32.mxu0 %vm3911_vm0, %v3912_v1  ;;  %v2733_v0 = vld [vmem:[#allocation3 + $0x18] sm:$0xff] }
0x1924   :  { %3673 = vmatpush3.bf16.msra.mxu0 %v3672_v4 }
0x1926   :  { %v2737_v11 = vld [vmem:[#allocation3 + $0x38] sm:$0xff] }
0x1927   :  { %3477 = vmatmul.mubr.msk.f32.vlgmr.msra.gmra.mrb[32].mxu0 %vm247_vm2, %v2730_v51 }
0x1928   :  { %3479 = vmatprep.mubr.msk.f32.mxu0 %vm3911_vm0, %v3912_v1 }
0x192b   :  { %3480 = vmatmul.mubr.msk.f32.gmra.mrb[34].mxu0 %vm247_vm2, %v2731_v5 }
0x192c   :  { %3482 = vmatprep.mubr.msk.f32.mxu0 %vm3911_vm0, %v3912_v1 }
0x192f   :  { %3483 = vmatmul.mubr.msk.f32.gmra.mrb[36].mxu0 %vm247_vm2, %v2732_v6 }
0x1930   :  { %3485 = vmatprep.mubr.msk.f32.mxu0 %vm3911_vm0, %v3912_v1 }
0x1933   :  { %3486 = vmatmul.mubr.msk.f32.gmra.mrb[38].mxu0 %vm247_vm2, %v2733_v0 }
0x1934   :  { %3488 = vmatprep.mubr.msk.f32.mxu0 %vm3911_vm0, %v3912_v1 }
0x1937   :  { %3489 = vmatmul.mubr.msk.f32.gmra.mrb[40].mxu0 %vm247_vm2, %v2734_v7 }
0x1938   :  { %3491 = vmatprep.mubr.msk.f32.mxu0 %vm3911_vm0, %v3912_v1 }
0x193b   :  { %3492 = vmatmul.mubr.msk.f32.gmra.mrb[42].mxu0 %vm247_vm2, %v2735_v8 }
0x193c   :  { %3494 = vmatprep.mubr.msk.f32.mxu0 %vm3911_vm0, %v3912_v1 }
0x193f   :  { %3495 = vmatmul.mubr.msk.f32.gmra.mrb[44].mxu0 %vm247_vm2, %v2736_v10 }
0x1940   :  { %3497 = vmatprep.mubr.msk.f32.mxu0 %vm3911_vm0, %v3912_v1 }
0x1943   :  { %3498 = vmatmul.mubr.msk.f32.gmra.mrb[46].mxu0 %vm247_vm2, %v2737_v11 }
0x1944   :  { %3500 = vmatprep.mubr.msk.f32.mxu0 %vm3911_vm0, %v3912_v1 }
0x19f2   :  { %v2620_v12 = vpop.f32.mrb[30].mxu0 }
0x19f3   :  { %v2695_v13 = vpop.f32.mrb[38].mxu1  ;;  %v3456_v15 = vpop.f32.mrb[31].mxu0 }
0x19f4   :  { %v2696_v16 = vadd.f32 %v2695_v13, %v2620_v12  ;;  %v3467_v21 = vpop.f32.mrb[39].mxu1 }
0x19f6   :  { %v2699_v18 = vadd.f32 %v4466_v30, %v2696_v16 }
0x19f8   :  { %3824 = vtanh.f32 %v2699_v18  ;;  %v2967_v40 = vmul.f32 -1.442695, %v2699_v18 }
0x19fa   :  { %v2843_v27 = vpop.f32.mrb[32].mxu0  ;;  %3826 = vpow2.f32 %v2967_v40 }
0x19fb   :  { %v2844_v20 = vadd.f32 %v2968_v19, %v2843_v27  ;;  %v3478_v22 = vpop.f32.mrb[33].mxu0 }
0x19fd   :  { %2887 = vst [vmem:[#allocation9] sm:$0xff] %v2844_v20 }
0x19fe   :  { %v2848_v9 = vpop.f32.mrb[34].mxu0 }
0x19ff   :  { %v2849_v14 = vadd.f32 %v2968_v19, %v2848_v9  ;;  %v3481_v45 = vpop.f32.mrb[35].mxu0 }
0x1a01   :  { %2888 = vst [vmem:[#allocation9 + $0x8] sm:$0xff] %v2849_v14 }
0x1a02   :  { %v3825_v1 = vpop.eup %3824  ;;  %v2853_v49 = vpop.f32.mrb[36].mxu0 }
0x1a03   :  { %v2854_v24 = vadd.f32 %v2968_v19, %v2853_v49  ;;  %v3484_v26 = vpop.f32.mrb[37].mxu0  ;;  %2709 = vrot.lane.b32.xlu0 %v3825_v1, %s3913_s1 }
0x1a04   :  { %v3827_v36 = vpop.eup %3826 }
0x1a05   :  { %2889 = vst [vmem:[#allocation9 + $0x10] sm:$0xff] %v2854_v24  ;;  %v2703_v41 = vadd.f32 1.0, %v3827_v36 }
0x1a06   :  { %v2858_v28 = vpop.f32.mrb[38].mxu0 }
0x1a07   :  { %v2859_v29 = vadd.f32 %v2968_v19, %v2858_v28  ;;  %v3487_v30 = vpop.f32.mrb[39].mxu0  ;;  %3828 = vrcp.f32 %v2703_v41 }
0x1a09   :  { %2890 = vst [vmem:[#allocation9 + $0x18] sm:$0xff] %v2859_v29 }
0x1a0a   :  { %v2863_v50 = vpop.f32.mrb[40].mxu0 }
0x1a0b   :  { %v2864_v53 = vadd.f32 %v2968_v19, %v2863_v50  ;;  %v3490_v31 = vpop.f32.mrb[41].mxu0 }
0x1a0d   :  { %2891 = vst [vmem:[#allocation9 + $0x20] sm:$0xff] %v2864_v53 }
0x1a0e   :  { %v2868_v32 = vpop.f32.mrb[42].mxu0 }
0x1a0f   :  { %v2869_v34 = vadd.f32 %v2968_v19, %v2868_v32  ;;  %v3493_v25 = vpop.f32.mrb[43].mxu0 }
0x1a11   :  { %2892 = vst [vmem:[#allocation9 + $0x28] sm:$0xff] %v2869_v34  ;;  %v3829_v42 = vpop.eup %3828 }
0x1a12   :  { %v2873_v35 = vpop.f32.mrb[44].mxu0  ;;  %v2707_v46 = vmul.f32 %v3829_v42, %v4476_v47 }
0x1a13   :  { %v2874_v37 = vadd.f32 %v2968_v19, %v2873_v35  ;;  %v3496_v38 = vpop.f32.mrb[45].mxu0 }
0x1a15   :  { %2893 = vst [vmem:[#allocation9 + $0x30] sm:$0xff] %v2874_v37 }
0x1a16   :  { %v2878_v17 = vpop.f32.mrb[46].mxu0 }
0x1a17   :  { %v2879_v33 = vadd.f32 %v2968_v19, %v2878_v17  ;;  %v3499_v39 = vpop.f32.mrb[47].mxu0 }
0x1a19   :  { %2894 = vst [vmem:[#allocation9 + $0x38] sm:$0xff] %v2879_v33 }
0x1a75   :  { %v2710_v43 = vpop.permute.xlu0 %2709 }
0x1a76   :  { %v2712_v44 = vmul.f32 %v3829_v42, %v2710_v43 }
0x1a78   :  { %2714 = vrot.lane.b32.xlu1 %v2712_v44, %s3913_s1 }
0x1aea   :  { %v2715_v56 = vpop.permute.xlu1 %2714 }
0x1aeb   :  { %v2717_v48 = vadd.f32 %v2715_v56, %v2707_v46 }
0x1aed   :  { %3830 = vtanh.f32 %v2717_v48 }
0x1af7   :  { %v3831_v52 = vpop.eup %3830 }
0x1af8   :  { %2720 = vrot.lane.b32.xlu0 %v3831_v52, %s3913_s1 }
0x1b6a   :  { %v2721_v54 = vpop.permute.xlu0 %2720 }
0x1b6b   :  { %v2723_v55 = vmul.f32 %v3829_v42, %v2721_v54 }
0x1b6d   :  { %2725 = vrot.lane.b32.xlu1 %v2723_v55, %s3914_s28 }
0x1bdf   :  { %v2726_v57 = vpop.permute.xlu1 %2725 }
0x1be0   :  { %2729 = vst.msk [vmem:[#allocation3 + $0x40] sm:$0xff] %vm247_vm2, %v2726_v57 }
0x1be7   :  { %v2738_v58 = vld [vmem:[#allocation3 + $0x40] sm:$0xff] }
0x1be8   :  { %3501 = vmatmul.mubr.msk.f32.gmra.mrb[48].mxu0 %vm247_vm2, %v2738_v58 }
0x1cbb   :  { %v2883_v63 = vpop.f32.mrb[48].mxu0 }
0x1cbc   :  { %v2884_v47 = vadd.f32 %v2968_v19, %v2883_v63  ;;  %v3502_v59 = vpop.f32.mrb[49].mxu0 }
0x1cbe   :  { %2895 = vst [vmem:[#allocation9 + $0x40] sm:$0xff] %v2884_v47 }
0x1cbf   :  { %3889 = shalt.err (!%p3886_p6)
}
0x1cc0   :  { %s3890_s23 = scalar_lea.hbm %s4548_s9, 1152 }
0x1cc1   :  { %p3891_p7 = scmp.ne.s32.totalorder %s4548_s9, %s3890_s23  ;;  %p3894_p8 = scmp.lt.u32.totalorder %s3890_s23, %s4548_s9 }
0x1cc3   :  { %p3896_p9 = pnand %p3894_p8, %p3891_p7 }
0x1cc5   :  { %3899 = shalt.err (!%p3896_p9)
}
0x1cc6   :  { %2907 = dma.vmem_to_hbm [thread:$0]  %s2902_s18, 1152, %s4548_s9, [#allocation6], %s3907_s19, %s3907_s19, %s3908_s20  }
0x1cc7   :  { %3904 = dma.done.wait [#allocation6], 1152  }
0x1cc8   :  { %3905 = vsyncadd [#allocation6], 4294966144 }
0x1cc9   :  { %2911 = vsyncpa [#allocation5], 1 }
0x1cca   :  { %2912 = vsyncpa [#allocation8], 1 }
0x1ccb   :  { %2913 = vsyncpa [#allocation6], 1 }

</bundles_post_ra>
